<compile_context>
chip_gen: v7x
topology: tpu7x:2x2x1
jax: 0.10.0
libtpu: 0.0.40
codegen_flags: <defaults>
</compile_context>

<pallas_src>
import jax
import jax.numpy as jnp
from jax.experimental import pallas as pl
from jax.experimental.pallas import tpu as pltpu


def _model_kernel(x_ref, w_ref, b_ref, out_ref, mean_ref):
    x2d = x_ref[...]        # (1024, 11) == v1[0, ci, 0, w]      (ci, w)
    w = w_ref[...]          # (1024, 11)  ConvTranspose2d weight (ci, co)
    b = b_ref[...]          # (11, 1)     bias                   (co, 1)

    # ConvTranspose2d(1024, 11, kernel_size=1) == channel contraction (MXU).
    # Contract ci (dim 0 of both operands): (ci,co) x (ci,w) -> (co, w).
    # Output is already in NCHW (co, w) order -> no transpose anywhere.
    v9 = jax.lax.dot_general(
        w, x2d,
        dimension_numbers=(((0,), (0,)), ((), ())),
        preferred_element_type=jnp.float32,
    ) + b                                                # (11_co, 11_w)

    # Elementwise chain (kept literal to match the PyTorch semantics).
    v10 = v9 > 0.0
    v4 = v9 * 0.4
    v5 = jnp.where(v10, v9, v4)
    v11 = v5 < 1.0
    v12 = v11.astype(jnp.float32) * 0.1
    v2 = v5 * 0.2
    v7 = jnp.where(v11, v2, v12)
    v3 = v7 * -0.9
    v6 = jnp.where(v11, v3, v7)

    out_ref[...] = v6                                    # (11_co, 11_w)

    # mean over the whole original input x (same elements as x2d).
    # Division folded into a compile-time constant scale.
    mean_ref[0, 0] = jnp.sum(x2d) * jnp.float32(1.0 / (1024 * 11))


def model_forward(x, weight, bias):
    """x: (1,1024,11,1) f32 NCHW. weight: (1024,11,1,1). bias: (11,)."""
    # v0 = x.view(1,1024,-1); v1 = v0.view(1,-1,1,11) -> v1[0,ci,0,w] = x[0,ci,w,0]
    x2d = x.reshape(1024, 11)            # (ci, w)  -- metadata-only reshape
    w2d = weight.reshape(1024, 11)       # (ci, co) -- metadata-only reshape
    b2d = bias.reshape(11, 1)            # (co, 1)

    out, mean = pl.pallas_call(
        _model_kernel,
        out_shape=(
            jax.ShapeDtypeStruct((11, 11), jnp.float32),  # v6 as (co, w)
            jax.ShapeDtypeStruct((1, 1), jnp.float32),    # mean(x)
        ),
        in_specs=[
            pl.BlockSpec(memory_space=pltpu.MemorySpace.VMEM),
            pl.BlockSpec(memory_space=pltpu.MemorySpace.VMEM),
            pl.BlockSpec(memory_space=pltpu.MemorySpace.VMEM),
        ],
        out_specs=(
            pl.BlockSpec(memory_space=pltpu.MemorySpace.VMEM),
            pl.BlockSpec(memory_space=pltpu.MemorySpace.SMEM),
        ),
        cost_estimate=pl.CostEstimate(
            flops=2 * 11 * 1024 * 11,
            bytes_accessed=(1024 * 11 + 1024 * 11 + 11 + 121 + 1) * 4,
            transcendentals=0,
        ),
    )(x2d, w2d, b2d)

    v6 = out.reshape(1, 11, 1, 11)       # (co, w) -> NCHW, no transpose needed
    v8 = mean[0, 0]
    # TODO(synk): torch.cat([v6, v8]) raises in PyTorch (0-d tensor cannot be
    # concatenated with a 4-D tensor); returning the pair instead.
    return v6, v8


def _reference(x, weight, bias):
    """Plain-JAX reference for correctness checking."""
    v1 = x.reshape(1, 1024, 1, 11)
    v9 = jnp.einsum("nchw,co->nohw", v1, weight.reshape(1024, 11)) \
        + bias.reshape(1, 11, 1, 1)
    v5 = jnp.where(v9 > 0, v9, v9 * 0.4)
    v11 = v5 < 1
    v7 = jnp.where(v11, v5 * 0.2, v11.astype(jnp.float32) * 0.1)
    v6 = jnp.where(v11, v7 * -0.9, v7)
    return v6, jnp.mean(x)


if __name__ == "__main__":
    key = jax.random.PRNGKey(0)
    kx, kw, kb = jax.random.split(key, 3)

    # Shapes implied by the module (views hardcode 1024 channels and 11 spatial).
    x = jax.random.normal(kx, (1, 1024, 11, 1), dtype=jnp.float32)
    # ConvTranspose2d(1024, 11, 1) parameters, deterministic synthetic init.
    weight = 0.05 * jax.random.normal(kw, (1024, 11, 1, 1), dtype=jnp.float32)
    bias = 0.1 * jax.random.normal(kb, (11,), dtype=jnp.float32)

    v6, v8 = jax.block_until_ready(model_forward(x, weight, bias))

    v6_ref, v8_ref = _reference(x, weight, bias)
    assert v6.shape == (1, 11, 1, 11)
    assert jnp.allclose(v6, v6_ref, atol=1e-4, rtol=1e-4)
    assert jnp.allclose(v8, v8_ref, atol=1e-5, rtol=1e-5)

    print("KERNEL_OK")
</pallas_src>

<mosaic_0001>
module attributes {stable_mosaic.version = 11 : i64} {
  func.func @_model_kernel(%arg0: memref<1024x11xf32, #tpu.memory_space<vmem>>, %arg1: memref<1024x11xf32, #tpu.memory_space<vmem>>, %arg2: memref<11x1xf32, #tpu.memory_space<vmem>>, %arg3: memref<11x11xf32, #tpu.memory_space<vmem>>, %arg4: memref<1x1xf32, #tpu.memory_space<smem>>) attributes {dimension_semantics = [], scalar_prefetch = 0 : i64, scratch_operands = 0 : i64, tpu.core_type = #tpu.core_type<tc>} {
    %c0 = arith.constant 0 : index
    %c0_0 = arith.constant 0 : index
    %0 = vector.load %arg0[%c0, %c0_0] : memref<1024x11xf32, #tpu.memory_space<vmem>>, vector<1024x11xf32>
    %c0_1 = arith.constant 0 : index
    %c0_2 = arith.constant 0 : index
    %1 = vector.load %arg1[%c0_1, %c0_2] : memref<1024x11xf32, #tpu.memory_space<vmem>>, vector<1024x11xf32>
    %c0_3 = arith.constant 0 : index
    %c0_4 = arith.constant 0 : index
    %2 = vector.load %arg2[%c0_3, %c0_4] : memref<11x1xf32, #tpu.memory_space<vmem>>, vector<11x1xf32>
    %cst = arith.constant dense<0.000000e+00> : vector<11x11xf32>
    %3 = tpu.matmul %1, %0, %cst {dimension_numbers = #tpu.dot_dimension_numbers<[0], [0], [1], [1], [0, 1, 1, 1], [], []>} : vector<1024x11xf32>, vector<1024x11xf32>, vector<11x11xf32> -> vector<11x11xf32>
    %4 = vector.broadcast %2 : vector<11x1xf32> to vector<11x11xf32>
    %5 = arith.addf %3, %4 : vector<11x11xf32>
    %cst_5 = arith.constant 0.000000e+00 : f32
    %6 = vector.broadcast %cst_5 : f32 to vector<11x11xf32>
    %7 = arith.cmpf ogt, %5, %6 : vector<11x11xf32>
    %cst_6 = arith.constant 4.000000e-01 : f32
    %8 = vector.broadcast %cst_6 : f32 to vector<11x11xf32>
    %9 = arith.mulf %5, %8 : vector<11x11xf32>
    %10 = arith.select %7, %5, %9 : vector<11x11xi1>, vector<11x11xf32>
    %cst_7 = arith.constant 1.000000e+00 : f32
    %11 = vector.broadcast %cst_7 : f32 to vector<11x11xf32>
    %12 = arith.cmpf olt, %10, %11 : vector<11x11xf32>
    %13 = arith.extui %12 : vector<11x11xi1> to vector<11x11xi32>
    %14 = arith.sitofp %13 : vector<11x11xi32> to vector<11x11xf32>
    %cst_8 = arith.constant 1.000000e-01 : f32
    %15 = vector.broadcast %cst_8 : f32 to vector<11x11xf32>
    %16 = arith.mulf %14, %15 : vector<11x11xf32>
    %cst_9 = arith.constant 2.000000e-01 : f32
    %17 = vector.broadcast %cst_9 : f32 to vector<11x11xf32>
    %18 = arith.mulf %10, %17 : vector<11x11xf32>
    %19 = arith.select %12, %18, %16 : vector<11x11xi1>, vector<11x11xf32>
    %cst_10 = arith.constant -0.899999976 : f32
    %20 = vector.broadcast %cst_10 : f32 to vector<11x11xf32>
    %21 = arith.mulf %19, %20 : vector<11x11xf32>
    %22 = arith.select %12, %21, %19 : vector<11x11xi1>, vector<11x11xf32>
    %c0_11 = arith.constant 0 : index
    %c0_12 = arith.constant 0 : index
    %23 = vector.load %arg3[%c0_11, %c0_12] : memref<11x11xf32, #tpu.memory_space<vmem>>, vector<11x11xf32>
    tpu.vector_store %arg3[%c0_11, %c0_12], %22 {strides = array<i32>} : memref<11x11xf32, #tpu.memory_space<vmem>>, vector<11x11xf32>,
    %24 = vector.shape_cast %0 : vector<1024x11xf32> to vector<1x1024x11xf32>
    %cst_13 = arith.constant dense<0.000000e+00> : vector<1xf32>
    %25 = vector.multi_reduction <add>, %24, %cst_13 [1, 2] : vector<1x1024x11xf32> to vector<1xf32>
    %26 = vector.shape_cast %25 : vector<1xf32> to vector<1x1x1xf32>
    %27 = vector.extract %26[0, 0, 0] : f32 from vector<1x1x1xf32>
    %cst_14 = arith.constant 8.87784117E-5 : f32
    %28 = arith.mulf %27, %cst_14 : f32
    %c0_15 = arith.constant 0 : index
    %c0_16 = arith.constant 0 : index
    %29 = memref.load %arg4[%c0_15, %c0_16] : memref<1x1xf32, #tpu.memory_space<smem>>
    memref.store %28, %arg4[%c0_15, %c0_16] : memref<1x1xf32, #tpu.memory_space<smem>>
    return
  }
}

</mosaic_0001>

<bundles_post_ra>
// kernel: tpu_custom_call.1
= control target key start
LH: loop header
LB: loop body
LE: loop exit
PB: predicated region body
PF: predicated region fallthrough
CT: control target
= control target key end

     0   :  { %10 = vsyncpa [#allocation3], 0  ;;  %vm864_vm0 = vcmask 89088   ;;  %s3111_s0 = inlined_call_operand.vmem [shape: f32[1024,11], index: 0, kind: input, shape index: {}]   ;;  %s3112_s1 = inlined_call_operand.vmem [shape: f32[1024,11], index: 1, kind: input, shape index: {}]   ;;  %s3113_s2 = inlined_call_operand.vmem [shape: f32[11,1], index: 2, kind: input, shape index: {}]   ;;  %s3114_s3 = inlined_call_operand.hbm [shape: f32[11,11], index: 3, kind: output, shape index: {0}]   ;;  %s3115_s4 = inlined_call_operand.hbm [shape: f32[1,1], index: 4, kind: output, shape index: {1}]  }
   0x1   :  { %v146_v0 = vld [vmem:[%s3112_s1] sm:$0xff]  ;;  %v147_v5 = vld [vmem:[%s3112_s1 + $0x8] sm:$0xff]  ;;  %v148_v12 = vld [vmem:[%s3112_s1 + $0x10] sm:$0xff] }
   0x2   :  { %v162_v1 = vld [vmem:[%s3112_s1 + $0x80] sm:$0xff]  ;;  %v163_v6 = vld [vmem:[%s3112_s1 + $0x88] sm:$0xff]  ;;  %v164_v13 = vld [vmem:[%s3112_s1 + $0x90] sm:$0xff] }
   0x3   :  { %v178_v2 = vld [vmem:[%s3112_s1 + $0x100] sm:$0xff]  ;;  %v1454_v3 = vpack.i.bf16 %v146_v0, %v162_v1  ;;  %v179_v8 = vld [vmem:[%s3112_s1 + $0x108] sm:$0xff]  ;;  %v1456_v10 = vpack.i.bf16 %v147_v5, %v163_v6  ;;  %v180_v14 = vld [vmem:[%s3112_s1 + $0x110] sm:$0xff]  ;;  %v1458_v16 = vpack.i.bf16 %v148_v12, %v164_v13 }
   0x4   :  { %v194_v4 = vld [vmem:[%s3112_s1 + $0x180] sm:$0xff]  ;;  %v195_v9 = vld [vmem:[%s3112_s1 + $0x188] sm:$0xff]  ;;  %v196_v15 = vld [vmem:[%s3112_s1 + $0x190] sm:$0xff] }
   0x5   :  { %v1496_v7 = vpack.i.bf16 %v178_v2, %v194_v4  ;;  %1455 = vxpose.xlu0.b32.start [1/16] (narrow) %v1454_v3, 16  ;;  %v1498_v11 = vpack.i.bf16 %v179_v8, %v195_v9  ;;  %v1500_v17 = vpack.i.bf16 %v180_v14, %v196_v15  ;;  %v149_v18 = vld [vmem:[%s3112_s1 + $0x18] sm:$0xff]  ;;  %v150_v24 = vld [vmem:[%s3112_s1 + $0x20] sm:$0xff]  ;;  %v151_v30 = vld [vmem:[%s3112_s1 + $0x28] sm:$0xff] }
   0x6   :  { %v165_v19 = vld [vmem:[%s3112_s1 + $0x98] sm:$0xff]  ;;  %v166_v25 = vld [vmem:[%s3112_s1 + $0xa0] sm:$0xff]  ;;  %v167_v31 = vld [vmem:[%s3112_s1 + $0xa8] sm:$0xff] }
   0x7   :  { %1497 = vxpose.xlu1.b32.start [1/16] (narrow) %v1496_v7, 16  ;;  %v181_v20 = vld [vmem:[%s3112_s1 + $0x118] sm:$0xff]  ;;  %v1460_v22 = vpack.i.bf16 %v149_v18, %v165_v19  ;;  %v182_v26 = vld [vmem:[%s3112_s1 + $0x120] sm:$0xff]  ;;  %v1462_v28 = vpack.i.bf16 %v150_v24, %v166_v25  ;;  %v183_v32 = vld [vmem:[%s3112_s1 + $0x128] sm:$0xff]  ;;  %v1464_v34 = vpack.i.bf16 %v151_v30, %v167_v31 }
   0x8   :  { %v197_v21 = vld [vmem:[%s3112_s1 + $0x198] sm:$0xff]  ;;  %v198_v27 = vld [vmem:[%s3112_s1 + $0x1a0] sm:$0xff]  ;;  %v199_v33 = vld [vmem:[%s3112_s1 + $0x1a8] sm:$0xff] }
   0x9   :  { %1457 = vxpose.xlu0.b32.cont [2/16] (narrow) %v1456_v10, 16  ;;  %v1502_v23 = vpack.i.bf16 %v181_v20, %v197_v21  ;;  %v1504_v29 = vpack.i.bf16 %v182_v26, %v198_v27  ;;  %v1506_v35 = vpack.i.bf16 %v183_v32, %v199_v33  ;;  %v152_v36 = vld [vmem:[%s3112_s1 + $0x30] sm:$0xff]  ;;  %v153_v42 = vld [vmem:[%s3112_s1 + $0x38] sm:$0xff]  ;;  %v154_v48 = vld [vmem:[%s3112_s1 + $0x40] sm:$0xff] }
   0xa   :  { %v168_v37 = vld [vmem:[%s3112_s1 + $0xb0] sm:$0xff]  ;;  %v169_v43 = vld [vmem:[%s3112_s1 + $0xb8] sm:$0xff]  ;;  %v170_v49 = vld [vmem:[%s3112_s1 + $0xc0] sm:$0xff] }
   0xb   :  { %1499 = vxpose.xlu1.b32.cont [2/16] (narrow) %v1498_v11, 16  ;;  %v184_v38 = vld [vmem:[%s3112_s1 + $0x130] sm:$0xff]  ;;  %v1466_v40 = vpack.i.bf16 %v152_v36, %v168_v37  ;;  %v185_v44 = vld [vmem:[%s3112_s1 + $0x138] sm:$0xff]  ;;  %v1468_v46 = vpack.i.bf16 %v153_v42, %v169_v43  ;;  %v186_v50 = vld [vmem:[%s3112_s1 + $0x140] sm:$0xff]  ;;  %v1470_v52 = vpack.i.bf16 %v154_v48, %v170_v49 }
   0xc   :  { %v200_v39 = vld [vmem:[%s3112_s1 + $0x1b0] sm:$0xff]  ;;  %v201_v45 = vld [vmem:[%s3112_s1 + $0x1b8] sm:$0xff]  ;;  %v202_v51 = vld [vmem:[%s3112_s1 + $0x1c0] sm:$0xff] }
   0xd   :  { %1459 = vxpose.xlu0.b32.cont [3/16] (narrow) %v1458_v16, 16  ;;  %v1508_v41 = vpack.i.bf16 %v184_v38, %v200_v39  ;;  %v1510_v47 = vpack.i.bf16 %v185_v44, %v201_v45  ;;  %v1512_v53 = vpack.i.bf16 %v186_v50, %v202_v51  ;;  %v155_v54 = vld [vmem:[%s3112_s1 + $0x48] sm:$0xff]  ;;  %v156_v60 = vld [vmem:[%s3112_s1 + $0x50] sm:$0xff]  ;;  %v157_v2 = vld [vmem:[%s3112_s1 + $0x58] sm:$0xff] }
   0xe   :  { %v171_v55 = vld [vmem:[%s3112_s1 + $0xc8] sm:$0xff]  ;;  %v172_v61 = vld [vmem:[%s3112_s1 + $0xd0] sm:$0xff]  ;;  %v173_v3 = vld [vmem:[%s3112_s1 + $0xd8] sm:$0xff] }
   0xf   :  { %1501 = vxpose.xlu1.b32.cont [3/16] (narrow) %v1500_v17, 16  ;;  %v187_v56 = vld [vmem:[%s3112_s1 + $0x148] sm:$0xff]  ;;  %v1472_v58 = vpack.i.bf16 %v155_v54, %v171_v55  ;;  %v188_v62 = vld [vmem:[%s3112_s1 + $0x150] sm:$0xff]  ;;  %v1474_v0 = vpack.i.bf16 %v156_v60, %v172_v61  ;;  %v189_v4 = vld [vmem:[%s3112_s1 + $0x158] sm:$0xff]  ;;  %v1476_v8 = vpack.i.bf16 %v157_v2, %v173_v3 }
  0x10   :  { %v203_v57 = vld [vmem:[%s3112_s1 + $0x1c8] sm:$0xff]  ;;  %v204_v63 = vld [vmem:[%s3112_s1 + $0x1d0] sm:$0xff]  ;;  %v205_v5 = vld [vmem:[%s3112_s1 + $0x1d8] sm:$0xff] }
  0x11   :  { %1461 = vxpose.xlu0.b32.cont [4/16] (narrow) %v1460_v22, 16  ;;  %v1514_v59 = vpack.i.bf16 %v187_v56, %v203_v57  ;;  %v1516_v1 = vpack.i.bf16 %v188_v62, %v204_v63  ;;  %v158_v6 = vld [vmem:[%s3112_s1 + $0x60] sm:$0xff]  ;;  %v1846_v9 = vld [vmem:[%s3111_s0 + $0x88] sm:$0xff]  ;;  %v1518_v12 = vpack.i.bf16 %v189_v4, %v205_v5  ;;  %v20_v15 = vld [vmem:[%s3111_s0 + $0x10] sm:$0xff] }
  0x12   :  { %v1841_v7 = vld [vmem:[%s3111_s0 + $0x80] sm:$0xff]  ;;  %v19_v11 = vld [vmem:[%s3111_s0 + $0x8] sm:$0xff]  ;;  %v21_v16 = vld [vmem:[%s3111_s0 + $0x18] sm:$0xff]  ;;  %v871_v22 = vsel %vm864_vm0, %v20_v15, 0.0 }
  0x13   :  { %1503 = vxpose.xlu1.b32.cont [4/16] (narrow) %v1502_v23, 16  ;;  %v18_v10 = vld [vmem:[%s3111_s0] sm:$0xff]  ;;  %v1318_v14 = vpack.c.bf16 %v1846_v9, %v1841_v7  ;;  %v869_v21 = vsel %vm864_vm0, %v19_v11, 0.0  ;;  %v159_v26 = vld [vmem:[%s3112_s1 + $0x68] sm:$0xff]  ;;  %v873_v27 = vsel %vm864_vm0, %v21_v16, 0.0  ;;  %v1910_v37 = vld [vmem:[%s3111_s0 + $0x30] sm:$0xff]  ;;  %v1324_v42 = vpack.c.bf16 %v21_v16, %v20_v15 }
  0x14   :  { %v174_v13 = vld [vmem:[%s3112_s1 + $0xe0] sm:$0xff]  ;;  %v1320_v17 = vpack.c.bf16 %v19_v11, %v18_v10  ;;  %v868_v18 = vsel %vm864_vm0, %v18_v10, 0.0  ;;  %v191_v30 = vld [vmem:[%s3112_s1 + $0x168] sm:$0xff]  ;;  %v160_v49 = vld [vmem:[%s3112_s1 + $0x70] sm:$0xff]  ;;  %v879_v56 = vsel %vm864_vm0, %v1910_v37, 0.0 }
  0x15   :  { %1463 = vxpose.xlu0.b32.cont [5/16] (narrow) %v1462_v28, 16  ;;  %v190_v19 = vld [vmem:[%s3112_s1 + $0x160] sm:$0xff]  ;;  %1319 = vmatprep.subr.bf16.mxu0 %v1318_v14  ;;  %v870_v24 = vadd.f32 %v869_v21, %v868_v18  ;;  %v1478_v25 = vpack.i.bf16 %v158_v6, %v174_v13  ;;  %v23_v31 = vld [vmem:[%s3111_s0 + $0x28] sm:$0xff]  ;;  %v176_v50 = vld [vmem:[%s3112_s1 + $0xf0] sm:$0xff] }
  0x16   :  { %v206_v20 = vld [vmem:[%s3112_s1 + $0x1e0] sm:$0xff]  ;;  %1321 = vmatpush3.bf16.msra.mxu0 %v1320_v17  ;;  %v207_v33 = vld [vmem:[%s3112_s1 + $0x1e8] sm:$0xff]  ;;  %v877_v44 = vsel %vm864_vm0, %v23_v31, 0.0  ;;  %v1946_v51 = vld [vmem:[%s3111_s0 + $0x38] sm:$0xff]  ;;  %v1482_v62 = vpack.i.bf16 %v160_v49, %v176_v50 }
  0x17   :  { %1505 = vxpose.xlu1.b32.cont [5/16] (narrow) %v1504_v29, 16  ;;  %v1877_v23 = vld [vmem:[%s3111_s0 + $0x20] sm:$0xff]  ;;  %v1520_v28 = vpack.i.bf16 %v190_v19, %v206_v20  ;;  %v175_v29 = vld [vmem:[%s3112_s1 + $0xe8] sm:$0xff]  ;;  %v872_v32 = vadd.f32 %v871_v22, %v870_v24  ;;  %v1522_v48 = vpack.i.bf16 %v191_v30, %v207_v33  ;;  %v192_v54 = vld [vmem:[%s3112_s1 + $0x170] sm:$0xff]  ;;  %v881_v63 = vsel %vm864_vm0, %v1946_v51, 0.0 }
  0x18   :  { %v1905_v36 = vld [vmem:[%s3111_s0 + $0x188] sm:$0xff]  ;;  %v1480_v43 = vpack.i.bf16 %v159_v26, %v175_v29  ;;  %v1928_v45 = vld [vmem:[%s3111_s0 + $0xa0] sm:$0xff]  ;;  %v208_v55 = vld [vmem:[%s3112_s1 + $0x1f0] sm:$0xff]  ;;  %v1328_v61 = vpack.c.bf16 %v23_v31, %v1877_v23  ;;  %v1332_v20 = vpack.c.bf16 %v1946_v51, %v1910_v37 }
  0x19   :  { %1465 = vxpose.xlu0.b32.cont [6/16] (narrow) %v1464_v34, 16  ;;  %v875_v34 = vsel %vm864_vm0, %v1877_v23, 0.0  ;;  %v874_v38 = vadd.f32 %v873_v27, %v872_v32  ;;  %v1961_v57 = vld [vmem:[%s3111_s0 + $0x40] sm:$0xff]  ;;  %v1971_v60 = vld [vmem:[%s3111_s0 + $0xb8] sm:$0xff]  ;;  %v1524_v3 = vpack.i.bf16 %v192_v54, %v208_v55  ;;  %v1997_v6 = vld [vmem:[%s3111_s0 + $0x48] sm:$0xff] }
  0x1a   :  { %v161_v4 = vld [vmem:[%s3112_s1 + $0x78] sm:$0xff]  ;;  %v883_v13 = vsel %vm864_vm0, %v1961_v57, 0.0  ;;  %v2012_v14 = vld [vmem:[%s3112_s1 + $0x200] sm:$0xff]  ;;  %v2022_v16 = vld [vmem:[%s3111_s0 + $0x50] sm:$0xff] }
  0x1b   :  { %1507 = vxpose.xlu1.b32.cont [6/16] (narrow) %v1506_v35, 16  ;;  %v1900_v35 = vld [vmem:[%s3111_s0 + $0x180] sm:$0xff]  ;;  %v177_v5 = vld [vmem:[%s3112_s1 + $0xf8] sm:$0xff]  ;;  %v2032_v19 = vld [vmem:[%s3111_s0 + $0xc8] sm:$0xff]  ;;  %v887_v32 = vsel %vm864_vm0, %v2022_v16, 0.0 }
  0x1c   :  { %v1350_v39 = vpack.c.bf16 %v1905_v36, %v1900_v35  ;;  %v193_v11 = vld [vmem:[%s3112_s1 + $0x178] sm:$0xff]  ;;  %v2017_v15 = vld [vmem:[%s3112_s1 + $0x280] sm:$0xff]  ;;  %v1484_v21 = vpack.i.bf16 %v161_v4, %v177_v5  ;;  %v2059_v30 = vld [vmem:[%s3111_s0 + $0x110] sm:$0xff] }
  0x1d   :  { %1467 = vxpose.xlu0.b32.cont [7/16] (narrow) %v1466_v40, 16  ;;  %v1917_v40 = vld [vmem:[%s3111_s0 + $0x90] sm:$0xff]  ;;  %v2027_v18 = vld [vmem:[%s3111_s0 + $0xc0] sm:$0xff]  ;;  %v2045_v24 = vld [vmem:[%s3111_s0 + $0x58] sm:$0xff]  ;;  %v1538_v49 = vpack.i.bf16 %v2012_v14, %v2017_v15 }
  0x1e   :  { %1351 = vmatprep.subr.bf16.mxu1 %v1350_v39  ;;  %v242_v22 = vld [vmem:[%s3112_s1 + $0x300] sm:$0xff]  ;;  %v1334_v26 = vpack.c.bf16 %v2032_v19, %v2027_v18  ;;  %v2064_v31 = vld [vmem:[%s3111_s0 + $0x118] sm:$0xff]  ;;  %v2071_v33 = vld [vmem:[%s3111_s0 + $0xd0] sm:$0xff] }
  0x1f   :  { %1509 = vxpose.xlu1.b32.cont [7/16] (narrow) %v1508_v41, 16  ;;  %v1922_v41 = vld [vmem:[%s3111_s0 + $0x98] sm:$0xff]  ;;  %v258_v23 = vld [vmem:[%s3112_s1 + $0x380] sm:$0xff]  ;;  %v211_v50 = vld [vmem:[%s3112_s1 + $0x208] sm:$0xff] }
  0x20   :  { %v2081_v37 = vld [vmem:[%s3111_s0 + $0x198] sm:$0xff]  ;;  %v227_v51 = vld [vmem:[%s3112_s1 + $0x288] sm:$0xff]  ;;  %v2146_v4 = vld [vmem:[%s3111_s0 + $0x1b0] sm:$0xff] }
  0x21   :  { %1469 = vxpose.xlu0.b32.cont [8/16] (narrow) %v1468_v46, 16  ;;  %v1933_v46 = vld [vmem:[%s3111_s0 + $0xa8] sm:$0xff]  ;;  %v2151_v5 = vld [vmem:[%s3111_s0 + $0x1b8] sm:$0xff]  ;;  %v1540_v14 = vpack.i.bf16 %v211_v50, %v227_v51  ;;  %v212_v15 = vld [vmem:[%s3112_s1 + $0x210] sm:$0xff] }
  0x23   :  { %1511 = vxpose.xlu1.b32.cont [8/16] (narrow) %v1510_v47, 16  ;;  %v1322_v47 = vpack.c.bf16 %v1922_v41, %v1917_v40 }
  0x25   :  { %1471 = vxpose.xlu0.b32.cont [9/16] (narrow) %v1470_v52, 16  ;;  %v876_v52 = vadd.f32 %v875_v34, %v874_v38  ;;  %1323 = vmatprep.subr.bf16.mxu0 %v1322_v47  ;;  %v2076_v34 = vld [vmem:[%s3111_s0 + $0x190] sm:$0xff]  ;;  %v1356_v38 = vpack.c.bf16 %v2064_v31, %v2059_v30  ;;  %v2100_v47 = vld [vmem:[%s3111_s0 + $0x1a8] sm:$0xff] }
  0x26   :  { %1325 = vmatpush3.bf16.msra.mxu0 %v1324_v42  ;;  %v2088_v42 = vld [vmem:[%s3111_s0 + $0xd8] sm:$0xff] }
  0x27   :  { %1513 = vxpose.xlu1.b32.cont [9/16] (narrow) %v1512_v53, 16  ;;  %v1326_v53 = vpack.c.bf16 %v1933_v46, %v1928_v45  ;;  %v1338_v55 = vpack.c.bf16 %v2088_v42, %v2071_v33 }
  0x29   :  { %1473 = vxpose.xlu0.b32.cont [10/16] (narrow) %v1472_v58, 16  ;;  %v878_v58 = vadd.f32 %v877_v44, %v876_v52  ;;  %1327 = vmatprep.subr.bf16.mxu0 %v1326_v53  ;;  %v2095_v44 = vld [vmem:[%s3111_s0 + $0x1a0] sm:$0xff]  ;;  %v243_v52 = vld [vmem:[%s3112_s1 + $0x308] sm:$0xff]  ;;  %v889_v53 = vsel %vm864_vm0, %v2045_v24, 0.0 }
  0x2a   :  { %1329 = vmatpush3.bf16.msra.mxu0 %v1328_v61  ;;  %v1358_v54 = vpack.c.bf16 %v2100_v47, %v2095_v44  ;;  %v2129_v61 = vld [vmem:[%s3111_s0 + $0x120] sm:$0xff] }
  0x2b   :  { %1515 = vxpose.xlu1.b32.cont [10/16] (narrow) %v1514_v59, 16  ;;  %v1966_v59 = vld [vmem:[%s3111_s0 + $0xb0] sm:$0xff] }
  0x2c   :  { %v1330_v2 = vpack.c.bf16 %v1971_v60, %v1966_v59 }
  0x2d   :  { %1475 = vxpose.xlu0.b32.cont [11/16] (narrow) %v1474_v0, 16  ;;  %v1979_v0 = vld [vmem:[%s3111_s0 + $0x100] sm:$0xff] }
  0x2e   :  { %1331 = vmatprep.subr.bf16.mxu0 %v1330_v2 }
  0x2f   :  { %1517 = vxpose.xlu1.b32.cont [11/16] (narrow) %v1516_v1, 16  ;;  %v1984_v1 = vld [vmem:[%s3111_s0 + $0x108] sm:$0xff]  ;;  %1333 = vmatpush3.bf16.msra.mxu0 %v1332_v20  ;;  %v244_v20 = vld [vmem:[%s3112_s1 + $0x310] sm:$0xff] }
  0x30   :  { %v1352_v10 = vpack.c.bf16 %v1984_v1, %v1979_v0  ;;  %1335 = vmatprep.subr.bf16.mxu0 %v1334_v26  ;;  %v2198_v26 = vld [vmem:[%s3111_s0 + $0x138] sm:$0xff] }
  0x31   :  { %1477 = vxpose.xlu0.b32.cont [12/16] (narrow) %v1476_v8, 16  ;;  %v880_v8 = vadd.f32 %v879_v56, %v878_v58  ;;  %v1580_v56 = vpack.i.bf16 %v242_v22, %v258_v23  ;;  %v2188_v23 = vld [vmem:[%s3111_s0 + $0x78] sm:$0xff] }
  0x32   :  { %1353 = vmatpush3.bf16.msra.mxu1 %v1352_v10  ;;  %v2161_v10 = vld [vmem:[%s3111_s0 + $0xe0] sm:$0xff] }
  0x33   :  { %1519 = vxpose.xlu1.b32.cont [12/16] (narrow) %v1518_v12, 16  ;;  %v209_v12 = vld [vmem:[%s3112_s1 + $0x1f8] sm:$0xff]  ;;  %v882_v17 = vadd.f32 %v881_v63, %v880_v8  ;;  %v259_v63 = vld [vmem:[%s3112_s1 + $0x388] sm:$0xff] }
  0x34   :  { %v1526_v27 = vpack.i.bf16 %v193_v11, %v209_v12  ;;  %v2166_v11 = vld [vmem:[%s3111_s0 + $0xe8] sm:$0xff]  ;;  %v1362_v12 = vpack.c.bf16 %v2151_v5, %v2146_v4  ;;  %v1582_v22 = vpack.i.bf16 %v243_v52, %v259_v63  ;;  %v2247_v63 = vld [vmem:[%s3111_s0 + $0x140] sm:$0xff] }
  0x35   :  { %1479 = vxpose.xlu0.b32.cont [13/16] (narrow) %v1478_v25, 16  ;;  %v885_v25 = vsel %vm864_vm0, %v1997_v6, 0.0  ;;  %v884_v29 = vadd.f32 %v883_v13, %v882_v17  ;;  %v1340_v13 = vpack.c.bf16 %v2045_v24, %v2022_v16  ;;  %v228_v17 = vld [vmem:[%s3112_s1 + $0x290] sm:$0xff]  ;;  %v1342_v16 = vpack.c.bf16 %v2166_v11, %v2161_v10 }
  0x36   :  { %v1542_v52 = vpack.i.bf16 %v212_v15, %v228_v17 }
  0x37   :  { %1521 = vxpose.xlu1.b32.cont [13/16] (narrow) %v1520_v28, 16  ;;  %v2054_v28 = vld [vmem:[%s3111_s0 + $0x60] sm:$0xff]  ;;  %v886_v39 = vadd.f32 %v885_v25, %v884_v29  ;;  %v2193_v25 = vld [vmem:[%s3111_s0 + $0x130] sm:$0xff] }
  0x38   :  { %v891_v2 = vsel %vm864_vm0, %v2054_v28, 0.0 }
  0x39   :  { %1481 = vxpose.xlu0.b32.cont [14/16] (narrow) %v1480_v43, 16  ;;  %v1354_v43 = vpack.c.bf16 %v2081_v37, %v2076_v34  ;;  %v888_v58 = vadd.f32 %v887_v32, %v886_v39  ;;  %v1364_v32 = vpack.c.bf16 %v2198_v26, %v2193_v25  ;;  %v2215_v39 = vld [vmem:[%s3111_s0 + $0x1c8] sm:$0xff] }
  0x3b   :  { %1523 = vxpose.xlu1.b32.cont [14/16] (narrow) %v1522_v48, 16  ;;  %v1336_v48 = vpack.c.bf16 %v1997_v6, %v1961_v57  ;;  %v2124_v57 = vld [vmem:[%s3111_s0 + $0x68] sm:$0xff]  ;;  %1355 = vmatprep.subr.bf16.mxu1 %v1354_v43  ;;  %v2156_v6 = vld [vmem:[%s3111_s0 + $0x70] sm:$0xff]  ;;  %v890_v8 = vadd.f32 %v889_v53, %v888_v58  ;;  %v213_v53 = vld [vmem:[%s3112_s1 + $0x218] sm:$0xff] }
  0x3c   :  { %1357 = vmatpush3.bf16.msra.mxu1 %v1356_v38  ;;  %v895_v29 = vsel %vm864_vm0, %v2156_v6, 0.0  ;;  %v2210_v38 = vld [vmem:[%s3111_s0 + $0x1c0] sm:$0xff]  ;;  %v1344_v51 = vpack.c.bf16 %v2124_v57, %v2054_v28 }
  0x3d   :  { %1483 = vxpose.xlu0.b32.cont [15/16] (narrow) %v1482_v62, 16  ;;  %v2134_v62 = vld [vmem:[%s3111_s0 + $0x128] sm:$0xff]  ;;  %1359 = vmatprep.subr.bf16.mxu1 %v1358_v54  ;;  %v892_v24 = vadd.f32 %v891_v2, %v890_v8  ;;  %v1366_v50 = vpack.c.bf16 %v2215_v39, %v2210_v38  ;;  %v229_v54 = vld [vmem:[%s3112_s1 + $0x298] sm:$0xff] }
  0x3e   :  { %1337 = vmatpush3.bf16.msra.mxu0 %v1336_v48  ;;  %v2220_v48 = vld [vmem:[%s3111_s0 + $0xf0] sm:$0xff]  ;;  %v2252_v2 = vld [vmem:[%s3111_s0 + $0x148] sm:$0xff] }
  0x3f   :  { %1525 = vxpose.xlu1.b32.cont [15/16] (narrow) %v1524_v3, 16  ;;  %v1360_v3 = vpack.c.bf16 %v2134_v62, %v2129_v61  ;;  %1339 = vmatprep.subr.bf16.mxu0 %v1338_v55  ;;  %v245_v55 = vld [vmem:[%s3112_s1 + $0x318] sm:$0xff] }
  0x41   :  { %1485 = vxpose.xlu0.b32.end [16/16] (narrow) %v1484_v21, 16  ;;  %v893_v21 = vsel %vm864_vm0, %v2124_v57, 0.0  ;;  %1361 = vmatpush3.bf16.msra.mxu1 %v1360_v3 }
  0x42   :  { %v894_v43 = vadd.f32 %v893_v21, %v892_v24  ;;  %1363 = vmatprep.subr.bf16.mxu1 %v1362_v12  ;;  %1341 = vmatpush3.bf16.msra.mxu0 %v1340_v13 }
  0x43   :  { %1527 = vxpose.xlu1.b32.end [16/16] (narrow) %v1526_v27, 16  ;;  %v260_v27 = vld [vmem:[%s3112_s1 + $0x390] sm:$0xff]  ;;  %1343 = vmatprep.subr.bf16.mxu0 %v1342_v16 }
  0x44   :  { %v1584_v57 = vpack.i.bf16 %v244_v20, %v260_v27  ;;  %v896_v58 = vadd.f32 %v895_v29, %v894_v43 }
  0x45   :  { %1539 = vxpose.xlu0.b32.start [1/16] (narrow) %v1538_v49, 16  ;;  %v2225_v49 = vld [vmem:[%s3111_s0 + $0xf8] sm:$0xff] }
  0x46   :  { %v1346_v28 = vpack.c.bf16 %v2225_v49, %v2220_v48 }
  0x47   :  { %1581 = vxpose.xlu1.b32.start [1/16] (narrow) %v1580_v56, 16  ;;  %v897_v56 = vsel %vm864_vm0, %v2188_v23, 0.0 }
  0x49   :  { %1541 = vxpose.xlu0.b32.cont [2/16] (narrow) %v1540_v14, 16 }
  0x4b   :  { %1583 = vxpose.xlu1.b32.cont [2/16] (narrow) %v1582_v22, 16 }
  0x4c   :  { %11 = vsyncpa [#allocation4], 0  ;;  %v261_v3 = vld [vmem:[%s3112_s1 + $0x398] sm:$0xff]  ;;  %v899_v8 = vsel %vm864_vm0, %v1841_v7, 0.0  ;;  %1365 = vmatpush3.bf16.msra.mxu1 %v1364_v32  ;;  %v1368_v12 = vpack.c.bf16 %v2252_v2, %v2247_v63  ;;  %v2264_v13 = vld [vmem:[%s3111_s0 + $0x1d0] sm:$0xff]  ;;  %v898_v15 = vadd.f32 %v897_v56, %v896_v58  ;;  %1345 = vmatpush3.bf16.msra.mxu0 %v1344_v51  ;;  %v1348_v7 = vpack.c.bf16 %v2188_v23, %v2156_v6 }
  0x4d   :  { %v2269_v14 = vld [vmem:[%s3111_s0 + $0x1d8] sm:$0xff]  ;;  %1367 = vmatprep.subr.bf16.mxu1 %v1366_v50  ;;  %v2278_v20 = vld [vmem:[%s3111_s0 + $0x280] sm:$0xff]  ;;  %v2283_v21 = vld [vmem:[%s3111_s0 + $0x288] sm:$0xff]  ;;  %1543 = vxpose.xlu0.b32.cont [3/16] (narrow) %v1542_v52, 16  ;;  %v1544_v16 = vpack.i.bf16 %v213_v53, %v229_v54  ;;  %v901_v23 = vsel %vm864_vm0, %v1846_v9, 0.0  ;;  %v1586_v27 = vpack.i.bf16 %v245_v55, %v261_v3  ;;  %v903_v51 = vsel %vm864_vm0, %v1917_v40, 0.0 }
  0x4e   :  { %v1370_v17 = vpack.c.bf16 %v2269_v14, %v2264_v13  ;;  %v214_v22 = vld [vmem:[%s3112_s1 + $0x220] sm:$0xff]  ;;  %1347 = vmatprep.subr.bf16.mxu0 %v1346_v28  ;;  %v1382_v24 = vpack.c.bf16 %v2283_v21, %v2278_v20  ;;  %v900_v32 = vadd.f32 %v899_v8, %v898_v15  ;;  %v2301_v43 = vld [vmem:[%s3111_s0 + $0x150] sm:$0xff]  ;;  %v2306_v9 = vld [vmem:[%s3111_s0 + $0x158] sm:$0xff]  ;;  %v905_v58 = vsel %vm864_vm0, %v1922_v41, 0.0 }
  0x4f   :  { %v230_v6 = vld [vmem:[%s3112_s1 + $0x2a0] sm:$0xff]  ;;  %1585 = vxpose.xlu1.b32.cont [3/16] (narrow) %v1584_v57, 16  ;;  %v1372_v52 = vpack.c.bf16 %v2306_v9, %v2301_v43  ;;  %v2323_v54 = vld [vmem:[%s3111_s0 + $0x1e8] sm:$0xff]  ;;  %vm866_vm5 = vcmask 83968  }
  0x50   :  { %v246_v29 = vld [vmem:[%s3112_s1 + $0x320] sm:$0xff]  ;;  %1369 = vmatpush3.bf16.msra.mxu1 %v1368_v12  ;;  %v902_v55 = vadd.f32 %v901_v23, %v900_v32  ;;  %1349 = vmatpush3.bf16.msra.mxu0 %v1348_v7  ;;  %v1546_v40 = vpack.i.bf16 %v214_v22, %v230_v6  ;;  %v215_v28 = vld [vmem:[%s3112_s1 + $0x228] sm:$0xff]  ;;  %v907_v7 = vsel %vm864_vm0, %v1928_v45, 0.0  ;;  %v2358_v22 = vld [vmem:[%s3111_s0 + $0x1f0] sm:$0xff] }
  0x51   :  { %v262_v50 = vld [vmem:[%s3112_s1 + $0x3a0] sm:$0xff]  ;;  %1371 = vmatprep.subr.bf16.mxu1 %v1370_v17  ;;  %1545 = vxpose.xlu0.b32.cont [4/16] (narrow) %v1544_v16, 16  ;;  %v231_v57 = vld [vmem:[%s3112_s1 + $0x2a8] sm:$0xff]  ;;  %v2363_v6 = vld [vmem:[%s3111_s0 + $0x1f8] sm:$0xff] }
  0x52   :  { %v2318_v53 = vld [vmem:[%s3111_s0 + $0x1e0] sm:$0xff]  ;;  %1383 = vmatprep.subr.bf16.mxu0 %v1382_v24  ;;  %v1588_v3 = vpack.i.bf16 %v246_v29, %v262_v50  ;;  %v247_v8 = vld [vmem:[%s3112_s1 + $0x328] sm:$0xff]  ;;  %v904_v17 = vadd.f32 %v903_v51, %v902_v55  ;;  %v1378_v24 = vpack.c.bf16 %v2363_v6, %v2358_v22  ;;  %v1548_v45 = vpack.i.bf16 %v215_v28, %v231_v57  ;;  %v2393_v55 = vld [vmem:[%s3111_s0 + $0x178] sm:$0xff] }
  0x53   :  { %v1374_v56 = vpack.c.bf16 %v2323_v54, %v2318_v53  ;;  %1587 = vxpose.xlu1.b32.cont [4/16] (narrow) %v1586_v27, 16  ;;  %v2341_v12 = vld [vmem:[%s3111_s0 + $0x160] sm:$0xff]  ;;  %v2346_v15 = vld [vmem:[%s3111_s0 + $0x168] sm:$0xff]  ;;  %v216_v27 = vld [vmem:[%s3112_s1 + $0x230] sm:$0xff]  ;;  %v909_v29 = vsel %vm864_vm0, %v1933_v46, 0.0  ;;  %v911_v57 = vsel %vm864_vm0, %v1966_v59, 0.0 }
  0x54   :  { %v263_v41 = vld [vmem:[%s3112_s1 + $0x3a8] sm:$0xff]  ;;  %1373 = vmatpush3.bf16.msra.mxu1 %v1372_v52  ;;  %v1376_v16 = vpack.c.bf16 %v2346_v15, %v2341_v12  ;;  %v906_v23 = vadd.f32 %v905_v58, %v904_v17  ;;  %v2375_v32 = vld [vmem:[%s3111_s0 + $0x380] sm:$0xff]  ;;  %v232_v52 = vld [vmem:[%s3112_s1 + $0x2b0] sm:$0xff] }
  0x55   :  { %1375 = vmatprep.subr.bf16.mxu1 %v1374_v56  ;;  %1547 = vxpose.xlu0.b32.cont [5/16] (narrow) %v1546_v40, 16  ;;  %3134 = vst [vmem:[#allocation8_spill] sm:$0xff] %v2375_v32  ;;  %v2380_v50 = vld [vmem:[%s3111_s0 + $0x388] sm:$0xff]  ;;  %v1590_v51 = vpack.i.bf16 %v247_v8, %v263_v41  ;;  %v2388_v46 = vld [vmem:[%s3111_s0 + $0x170] sm:$0xff]  ;;  %v1550_v17 = vpack.i.bf16 %v216_v27, %v232_v52  ;;  %v913_v41 = vsel %vm864_vm0, %v1971_v60, 0.0  ;;  %v217_v59 = vld [vmem:[%s3112_s1 + $0x238] sm:$0xff] }
  0x56   :  { %3135 = vst [vmem:[#allocation9_spill] sm:$0xff] %v2380_v50  ;;  %v908_v56 = vadd.f32 %v907_v7, %v906_v23  ;;  %v248_v40 = vld [vmem:[%s3112_s1 + $0x330] sm:$0xff]  ;;  %v1380_v58 = vpack.c.bf16 %v2393_v55, %v2388_v46  ;;  %v1414_v8 = vpack.c.bf16 %v2380_v50, %v2375_v32  ;;  %v915_v60 = vsel %vm864_vm0, %v2027_v18, 0.0  ;;  %v250_v18 = vld [vmem:[%s3112_s1 + $0x340] sm:$0xff] }
  0x57   :  { %1589 = vxpose.xlu1.b32.cont [5/16] (narrow) %v1588_v3, 16  ;;  %v264_v28 = vld [vmem:[%s3112_s1 + $0x3b0] sm:$0xff] }
  0x58   :  { %1377 = vmatpush3.bf16.msra.mxu1 %v1376_v16  ;;  %v910_v3 = vadd.f32 %v909_v29, %v908_v56  ;;  %v1592_v7 = vpack.i.bf16 %v248_v40, %v264_v28  ;;  %v233_v16 = vld [vmem:[%s3112_s1 + $0x2b8] sm:$0xff]  ;;  %v218_v56 = vld [vmem:[%s3112_s1 + $0x240] sm:$0xff]  ;;  %v2926_v32 = vld [vmem:[%s3111_s0 + $0x370] sm:$0xff] }
  0x59   :  { %1379 = vmatprep.subr.bf16.mxu1 %v1378_v24  ;;  %1549 = vxpose.xlu0.b32.cont [6/16] (narrow) %v1548_v45, 16  ;;  %v249_v24 = vld [vmem:[%s3112_s1 + $0x338] sm:$0xff]  ;;  %v1552_v29 = vpack.i.bf16 %v217_v59, %v233_v16  ;;  %v234_v40 = vld [vmem:[%s3112_s1 + $0x2c0] sm:$0xff]  ;;  %v267_v16 = vld [vmem:[%s3112_s1 + $0x3c8] sm:$0xff] }
  0x5a   :  { %v912_v23 = vadd.f32 %v911_v57, %v910_v3  ;;  %v265_v45 = vld [vmem:[%s3112_s1 + $0x3b8] sm:$0xff]  ;;  %v266_v57 = vld [vmem:[%s3112_s1 + $0x3c0] sm:$0xff]  ;;  %v1554_v3 = vpack.i.bf16 %v218_v56, %v234_v40 }
  0x5b   :  { %1591 = vxpose.xlu1.b32.cont [6/16] (narrow) %v1590_v51, 16  ;;  %v917_v51 = vsel %vm864_vm0, %v2032_v19, 0.0  ;;  %v1594_v52 = vpack.i.bf16 %v249_v24, %v265_v45  ;;  %v919_v19 = vsel %vm864_vm0, %v2071_v33, 0.0  ;;  %v251_v33 = vld [vmem:[%s3112_s1 + $0x348] sm:$0xff]  ;;  %v925_v45 = vsel %vm864_vm0, %v2166_v11, 0.0 }
  0x5c   :  { %1381 = vmatpush3.bf16.msra.mxu1 %v1380_v58  ;;  %v914_v27 = vadd.f32 %v913_v41, %v912_v23  ;;  %v219_v41 = vld [vmem:[%s3112_s1 + $0x248] sm:$0xff]  ;;  %v927_v11 = vsel %vm864_vm0, %v2220_v48, 0.0  ;;  %v253_v48 = vld [vmem:[%s3112_s1 + $0x358] sm:$0xff] }
  0x5d   :  { %1415 = vmatprep.subr.bf16.mxu1 %v1414_v8  ;;  %1551 = vxpose.xlu0.b32.cont [7/16] (narrow) %v1550_v17, 16  ;;  %v921_v8 = vsel %vm864_vm0, %v2088_v42, 0.0  ;;  %v1596_v17 = vpack.i.bf16 %v250_v18, %v266_v57  ;;  %v923_v42 = vsel %vm864_vm0, %v2161_v10, 0.0  ;;  %v252_v10 = vld [vmem:[%s3112_s1 + $0x350] sm:$0xff]  ;;  %v221_v57 = vld [vmem:[%s3112_s1 + $0x258] sm:$0xff] }
  0x5e   :  { %v916_v28 = vadd.f32 %v915_v60, %v914_v27  ;;  %v1598_v60 = vpack.i.bf16 %v251_v33, %v267_v16  ;;  %v220_v27 = vld [vmem:[%s3112_s1 + $0x250] sm:$0xff]  ;;  %v238_v33 = vld [vmem:[%s3112_s1 + $0x2e0] sm:$0xff] }
  0x5f   :  { %1593 = vxpose.xlu1.b32.cont [7/16] (narrow) %v1592_v7, 16  ;;  %v235_v7 = vld [vmem:[%s3112_s1 + $0x2c8] sm:$0xff] }
  0x60   :  { %v918_v58 = vadd.f32 %v917_v51, %v916_v28  ;;  %v1556_v24 = vpack.i.bf16 %v219_v41, %v235_v7  ;;  %v929_v28 = vsel %vm864_vm0, %v2225_v49, 0.0  ;;  %v931_v49 = vsel %vm864_vm0, %v1979_v0, 0.0  ;;  %v254_v0 = vld [vmem:[%s3112_s1 + $0x360] sm:$0xff] }
  0x61   :  { %1553 = vxpose.xlu0.b32.cont [8/16] (narrow) %v1552_v29, 16  ;;  %v236_v29 = vld [vmem:[%s3112_s1 + $0x2d0] sm:$0xff]  ;;  %v933_v41 = vsel %vm864_vm0, %v1984_v1, 0.0  ;;  %v935_v1 = vsel %vm864_vm0, %v2059_v30, 0.0  ;;  %v255_v30 = vld [vmem:[%s3112_s1 + $0x368] sm:$0xff] }
  0x62   :  { %v920_v59 = vadd.f32 %v919_v19, %v918_v58  ;;  %v1558_v40 = vpack.i.bf16 %v220_v27, %v236_v29  ;;  %v237_v19 = vld [vmem:[%s3112_s1 + $0x2d8] sm:$0xff]  ;;  %v223_v27 = vld [vmem:[%s3112_s1 + $0x268] sm:$0xff] }
  0x63   :  { %1595 = vxpose.xlu1.b32.cont [8/16] (narrow) %v1594_v52, 16  ;;  %v268_v52 = vld [vmem:[%s3112_s1 + $0x3d0] sm:$0xff]  ;;  %v239_v29 = vld [vmem:[%s3112_s1 + $0x2e8] sm:$0xff] }
  0x64   :  { %v922_v23 = vadd.f32 %v921_v8, %v920_v59  ;;  %v1600_v18 = vpack.i.bf16 %v252_v10, %v268_v52  ;;  %v222_v59 = vld [vmem:[%s3112_s1 + $0x260] sm:$0xff]  ;;  %v271_v10 = vld [vmem:[%s3112_s1 + $0x3e8] sm:$0xff] }
  0x65   :  { %1555 = vxpose.xlu0.b32.cont [9/16] (narrow) %v1554_v3, 16  ;;  %v269_v3 = vld [vmem:[%s3112_s1 + $0x3d8] sm:$0xff] }
  0x66   :  { %v924_v51 = vadd.f32 %v923_v42, %v922_v23  ;;  %v1602_v7 = vpack.i.bf16 %v253_v48, %v269_v3  ;;  %v270_v42 = vld [vmem:[%s3112_s1 + $0x3e0] sm:$0xff]  ;;  %v945_v3 = vsel %vm864_vm0, %v2198_v26, 0.0  ;;  %v947_v26 = vsel %vm864_vm0, %v2247_v63, 0.0 }
  0x67   :  { %1597 = vxpose.xlu1.b32.cont [9/16] (narrow) %v1596_v17, 16  ;;  %v1560_v17 = vpack.i.bf16 %v221_v57, %v237_v19  ;;  %v272_v19 = vld [vmem:[%s3112_s1 + $0x3f0] sm:$0xff]  ;;  %v2560_v63 = vld [vmem:[%s3111_s0 + $0x300] sm:$0xff] }
  0x68   :  { %v926_v56 = vadd.f32 %v925_v45, %v924_v51  ;;  %v937_v45 = vsel %vm864_vm0, %v2064_v31, 0.0  ;;  %v939_v31 = vsel %vm864_vm0, %v2129_v61, 0.0  ;;  %v256_v61 = vld [vmem:[%s3112_s1 + $0x370] sm:$0xff] }
  0x69   :  { %1557 = vxpose.xlu0.b32.cont [10/16] (narrow) %v1556_v24, 16  ;;  %v1562_v24 = vpack.i.bf16 %v222_v59, %v238_v33 }
  0x6a   :  { %v928_v58 = vadd.f32 %v927_v11, %v926_v56  ;;  %v1564_v11 = vpack.i.bf16 %v223_v27, %v239_v29  ;;  %v941_v56 = vsel %vm864_vm0, %v2134_v62, 0.0  ;;  %v943_v62 = vsel %vm864_vm0, %v2193_v25, 0.0  ;;  %v257_v25 = vld [vmem:[%s3112_s1 + $0x378] sm:$0xff]  ;;  %v2579_v29 = vld [vmem:[%s3111_s0 + $0x208] sm:$0xff] }
  0x6b   :  { %1599 = vxpose.xlu1.b32.cont [10/16] (narrow) %v1598_v60, 16  ;;  %v1604_v60 = vpack.i.bf16 %v254_v0, %v270_v42  ;;  %v957_v27 = vsel %vm864_vm0, %v2346_v15, 0.0 }
  0x6c   :  { %v930_v8 = vadd.f32 %v929_v28, %v928_v58  ;;  %v224_v28 = vld [vmem:[%s3112_s1 + $0x270] sm:$0xff] }
  0x6d   :  { %1559 = vxpose.xlu0.b32.cont [11/16] (narrow) %v1558_v40, 16  ;;  %v1606_v40 = vpack.i.bf16 %v255_v30, %v271_v10  ;;  %v959_v30 = vsel %vm864_vm0, %v2388_v46, 0.0 }
  0x6e   :  { %v932_v16 = vadd.f32 %v931_v49, %v930_v8  ;;  %v1608_v49 = vpack.i.bf16 %v256_v61, %v272_v19  ;;  %v225_v8 = vld [vmem:[%s3112_s1 + $0x278] sm:$0xff]  ;;  %v2622_v61 = vld [vmem:[%s3111_s0 + $0x210] sm:$0xff] }
  0x6f   :  { %1601 = vxpose.xlu1.b32.cont [11/16] (narrow) %v1600_v18, 16  ;;  %v240_v18 = vld [vmem:[%s3112_s1 + $0x2f0] sm:$0xff] }
  0x70   :  { %v934_v23 = vadd.f32 %v933_v41, %v932_v16  ;;  %v1566_v48 = vpack.i.bf16 %v224_v28, %v240_v18  ;;  %v949_v16 = vsel %vm864_vm0, %v2252_v2, 0.0  ;;  %v2565_v2 = vld [vmem:[%s3111_s0 + $0x308] sm:$0xff]  ;;  %v2612_v18 = vld [vmem:[%s3111_s0 + $0x310] sm:$0xff] }
  0x71   :  { %1561 = vxpose.xlu0.b32.cont [12/16] (narrow) %v1560_v17, 16  ;;  %v241_v17 = vld [vmem:[%s3112_s1 + $0x2f8] sm:$0xff] }
  0x72   :  { %v936_v51 = vadd.f32 %v935_v1, %v934_v23  ;;  %v1568_v33 = vpack.i.bf16 %v225_v8, %v241_v17  ;;  %v951_v1 = vsel %vm864_vm0, %v2301_v43, 0.0  ;;  %v955_v43 = vsel %vm864_vm0, %v2341_v12, 0.0  ;;  %v2589_v12 = vld [vmem:[%s3111_s0 + $0x298] sm:$0xff]  ;;  %v2636_v17 = vld [vmem:[%s3111_s0 + $0x2a0] sm:$0xff] }
  0x73   :  { %1603 = vxpose.xlu1.b32.cont [12/16] (narrow) %v1602_v7, 16  ;;  %v273_v7 = vld [vmem:[%s3112_s1 + $0x3f8] sm:$0xff] }
  0x74   :  { %v938_v52 = vadd.f32 %v937_v45, %v936_v51  ;;  %v1610_v0 = vpack.i.bf16 %v257_v25, %v273_v7  ;;  %v2584_v51 = vld [vmem:[%s3111_s0 + $0x290] sm:$0xff] }
  0x75   :  { %1563 = vxpose.xlu0.b32.cont [13/16] (narrow) %v1562_v24, 16  ;;  %v953_v24 = vsel %vm864_vm0, %v2306_v9, 0.0 }
  0x76   :  { %v940_v57 = vadd.f32 %v939_v31, %v938_v52  ;;  %v1416_v31 = vpack.c.bf16 %v2565_v2, %v2560_v63  ;;  %v1386_v52 = vpack.c.bf16 %v2589_v12, %v2584_v51 }
  0x77   :  { %1605 = vxpose.xlu1.b32.cont [13/16] (narrow) %v1604_v60, 16  ;;  %v2572_v60 = vld [vmem:[%s3111_s0 + $0x200] sm:$0xff] }
  0x78   :  { %v942_v58 = vadd.f32 %v941_v56, %v940_v57  ;;  %v1384_v15 = vpack.c.bf16 %v2579_v29, %v2572_v60  ;;  %v2607_v56 = vld [vmem:[%s3111_s0 + $0x398] sm:$0xff] }
  0x79   :  { %1565 = vxpose.xlu0.b32.cont [14/16] (narrow) %v1564_v11, 16  ;;  %v2602_v11 = vld [vmem:[%s3111_s0 + $0x390] sm:$0xff]  ;;  %3137 = vst [vmem:[#allocation11_spill] sm:$0xff] %v2607_v56  ;;  %v2617_v57 = vld [vmem:[%s3111_s0 + $0x318] sm:$0xff] }
  0x7a   :  { %v944_v41 = vadd.f32 %v943_v62, %v942_v58  ;;  %3136 = vst [vmem:[#allocation10_spill] sm:$0xff] %v2602_v11  ;;  %v963_v58 = vsel %vm864_vm0, %v1900_v35, 0.0  ;;  %v1418_v8 = vpack.c.bf16 %v2607_v56, %v2602_v11  ;;  %v2641_v35 = vld [vmem:[%s3111_s0 + $0x2a8] sm:$0xff]  ;;  %v1420_v7 = vpack.c.bf16 %v2617_v57, %v2612_v18  ;;  %v2913_v56 = vld [vmem:[%s3111_s0 + $0x2f8] sm:$0xff] }
  0x7b   :  { %1607 = vxpose.xlu1.b32.cont [14/16] (narrow) %v1606_v40, 16  ;;  %v983_v11 = vsel %vm864_vm0, %v2264_v13, 0.0  ;;  %v2931_v13 = vld [vmem:[%s3111_s0 + $0x378] sm:$0xff] }
  0x7c   :  { %v946_v59 = vadd.f32 %v945_v3, %v944_v41  ;;  %v2629_v3 = vld [vmem:[%s3111_s0 + $0x218] sm:$0xff]  ;;  %v961_v41 = vsel %vm864_vm0, %v2393_v55, 0.0  ;;  %v2659_v55 = vld [vmem:[%s3111_s0 + $0x3a8] sm:$0xff] }
  0x7d   :  { %1567 = vxpose.xlu0.b32.cont [15/16] (narrow) %v1566_v48, 16  ;;  %v1388_v25 = vpack.c.bf16 %v2629_v3, %v2622_v61  ;;  %3139 = vst [vmem:[#allocation13_spill] sm:$0xff] %v2659_v55 }
  0x7e   :  { %v948_v42 = vadd.f32 %v947_v26, %v946_v59  ;;  %v1390_v26 = vpack.c.bf16 %v2641_v35, %v2636_v17  ;;  %v2654_v59 = vld [vmem:[%s3111_s0 + $0x3a0] sm:$0xff] }
  0x7f   :  { %1609 = vxpose.xlu1.b32.cont [15/16] (narrow) %v1608_v49, 16  ;;  %3138 = vst [vmem:[#allocation12_spill] sm:$0xff] %v2654_v59 }
  0x80   :  { %v950_v23 = vadd.f32 %v949_v16, %v948_v42 }
  0x81   :  { %1569 = vxpose.xlu0.b32.end [16/16] (narrow) %v1568_v33, 16 }
  0x82   :  { %v952_v45 = vadd.f32 %v951_v1, %v950_v23 }
  0x83   :  { %1611 = vxpose.xlu1.b32.end [16/16] (narrow) %v1610_v0, 16 }
  0x84   :  { %v954_v9 = vadd.f32 %v953_v24, %v952_v45  ;;  %v2664_v45 = vld [vmem:[%s3111_s0 + $0x220] sm:$0xff] }
  0x85   :  { %v1486_v10 = vpop.trf.xlu0 }
  0x86   :  { %v956_v46 = vadd.f32 %v955_v43, %v954_v9  ;;  %v1487_v28 = vunpack.i.l.bf16 %v1486_v10  ;;  %v1490_v19 = vunpack.i.h.bf16 %v1486_v10  ;;  %v1422_v43 = vpack.c.bf16 %v2659_v55, %v2654_v59  ;;  %v2671_v9 = vld [vmem:[%s3111_s0 + $0x320] sm:$0xff] }
  0x87   :  { %v1528_v40 = vpop.trf.xlu1  ;;  %v965_v10 = vsel %vm864_vm0, %v1905_v36, 0.0  ;;  %v2872_v55 = vld [vmem:[%s3111_s0 + $0x260] sm:$0xff] }
  0x88   :  { %v1529_v62 = vunpack.i.l.bf16 %v1528_v40  ;;  %v958_v48 = vadd.f32 %v957_v27, %v956_v46  ;;  %606 = vmatprep.mubr.f32.mxu0 %v1487_v28  ;;  %v1532_v49 = vunpack.i.h.bf16 %v1528_v40  ;;  %v2676_v27 = vld [vmem:[%s3111_s0 + $0x328] sm:$0xff]  ;;  %v2700_v40 = vld [vmem:[%s3111_s0 + $0x2b0] sm:$0xff]  ;;  %v2705_v28 = vld [vmem:[%s3111_s0 + $0x2b8] sm:$0xff] }
  0x89   :  { %607 = vmatmul.mubr.f32.vlgmr.msra.gmra.mrb[0].mxu0 %v1490_v19  ;;  %v1491_v33 = vpop.trf.xlu0  ;;  %v967_v19 = vsel %vm864_vm0, %v2076_v34, 0.0  ;;  %v2723_v34 = vld [vmem:[%s3111_s0 + $0x330] sm:$0xff] }
  0x8a   :  { %681 = vmatprep.mubr.f32.mxu1 %v1529_v62  ;;  %v960_v16 = vadd.f32 %v959_v30, %v958_v48  ;;  %1385 = vmatpush3.bf16.msra.mxu0 %v1384_v15  ;;  %v1492_v42 = vunpack.i.l.bf16 %v1491_v33  ;;  %v1495_v1 = vunpack.i.h.bf16 %v1491_v33  ;;  %v2683_v15 = vld [vmem:[%s3111_s0 + $0x228] sm:$0xff]  ;;  %v1424_v62 = vpack.c.bf16 %v2676_v27, %v2671_v9 }
  0x8b   :  { %682 = vmatmul.mubr.f32.vlgmr.msra.gmra.mrb[0].mxu1 %v1532_v49  ;;  %v1533_v0 = vpop.trf.xlu1  ;;  %1387 = vmatprep.subr.bf16.mxu0 %v1386_v52  ;;  %v2693_v52 = vld [vmem:[%s3111_s0 + $0x3b8] sm:$0xff]  ;;  %v1392_v36 = vpack.c.bf16 %v2683_v15, %v2664_v45  ;;  %v2716_v49 = vld [vmem:[%s3111_s0 + $0x230] sm:$0xff]  ;;  %v2745_v33 = vld [vmem:[%s3111_s0 + $0x3c8] sm:$0xff] }
  0x8c   :  { %1417 = vmatpush3.bf16.msra.mxu1 %v1416_v31  ;;  %v1534_v23 = vunpack.i.l.bf16 %v1533_v0  ;;  %v962_v24 = vadd.f32 %v961_v41, %v960_v16  ;;  %611 = vmatprep.mubr.f32.mxu0 %v1492_v42  ;;  %v1537_v30 = vunpack.i.h.bf16 %v1533_v0  ;;  %v2688_v31 = vld [vmem:[%s3111_s0 + $0x3b0] sm:$0xff]  ;;  %3141 = vst [vmem:[#allocation15_spill] sm:$0xff] %v2693_v52  ;;  %v2728_v41 = vld [vmem:[%s3111_s0 + $0x338] sm:$0xff]  ;;  %3143 = vst [vmem:[#allocation17_spill] sm:$0xff] %v2745_v33 }
  0x8d   :  { %1419 = vmatprep.subr.bf16.mxu1 %v1418_v8  ;;  %3140 = vst [vmem:[#allocation14_spill] sm:$0xff] %v2688_v31  ;;  %612 = vmatmul.mubr.f32.gmra.mrb[2].mxu0 %v1495_v1  ;;  %v1426_v8 = vpack.c.bf16 %v2693_v52, %v2688_v31  ;;  %v2752_v0 = vld [vmem:[%s3111_s0 + $0x2c0] sm:$0xff]  ;;  %v2757_v42 = vld [vmem:[%s3111_s0 + $0x2c8] sm:$0xff]  ;;  %v971_v1 = vsel %vm864_vm0, %v2095_v44, 0.0  ;;  %v979_v31 = vsel %vm864_vm0, %v2210_v38, 0.0 }
  0x8e   :  { %686 = vmatprep.mubr.f32.mxu1 %v1534_v23  ;;  %v964_v46 = vadd.f32 %v963_v58, %v962_v24  ;;  %1389 = vmatpush3.bf16.msra.mxu0 %v1388_v25  ;;  %v1394_v58 = vpack.c.bf16 %v2705_v28, %v2700_v40  ;;  %v969_v25 = vsel %vm864_vm0, %v2081_v37, 0.0  ;;  %v1428_v23 = vpack.c.bf16 %v2728_v41, %v2723_v34  ;;  %v2775_v44 = vld [vmem:[%s3111_s0 + $0x340] sm:$0xff]  ;;  %v2861_v52 = vld [vmem:[%s3111_s0 + $0x2e8] sm:$0xff] }
  0x8f   :  { %687 = vmatmul.mubr.f32.gmra.mrb[2].mxu1 %v1537_v30  ;;  %1391 = vmatprep.subr.bf16.mxu0 %v1390_v26  ;;  %v2740_v26 = vld [vmem:[%s3111_s0 + $0x3c0] sm:$0xff]  ;;  %v1398_v24 = vpack.c.bf16 %v2757_v42, %v2752_v0 }
  0x90   :  { %1421 = vmatpush3.bf16.msra.mxu1 %v1420_v7  ;;  %v966_v48 = vadd.f32 %v965_v10, %v964_v46  ;;  %v2735_v7 = vld [vmem:[%s3111_s0 + $0x238] sm:$0xff]  ;;  %3142 = vst [vmem:[#allocation16_spill] sm:$0xff] %v2740_v26  ;;  %v2768_v30 = vld [vmem:[%s3111_s0 + $0x240] sm:$0xff]  ;;  %v1430_v10 = vpack.c.bf16 %v2745_v33, %v2740_v26  ;;  %v2780_v46 = vld [vmem:[%s3111_s0 + $0x348] sm:$0xff] }
  0x91   :  { %1423 = vmatprep.subr.bf16.mxu1 %v1422_v43  ;;  %v1396_v37 = vpack.c.bf16 %v2735_v7, %v2716_v49  ;;  %v2820_v33 = vld [vmem:[%s3111_s0 + $0x250] sm:$0xff]  ;;  %v2879_v38 = vld [vmem:[%s3111_s0 + $0x360] sm:$0xff] }
  0x92   :  { %v968_v16 = vadd.f32 %v967_v19, %v966_v48  ;;  %1393 = vmatpush3.bf16.msra.mxu0 %v1392_v36  ;;  %v973_v36 = vsel %vm864_vm0, %v2100_v47, 0.0  ;;  %v2787_v19 = vld [vmem:[%s3111_s0 + $0x248] sm:$0xff]  ;;  %3148 = vst [vmem:[#allocation22_spill] sm:$0xff] %v2879_v38 }
  0x93   :  { %1395 = vmatprep.subr.bf16.mxu0 %v1394_v58  ;;  %v2797_v58 = vld [vmem:[%s3111_s0 + $0x3d8] sm:$0xff]  ;;  %v1400_v47 = vpack.c.bf16 %v2787_v19, %v2768_v30 }
  0x94   :  { %1425 = vmatpush3.bf16.msra.mxu1 %v1424_v62  ;;  %v970_v43 = vadd.f32 %v969_v25, %v968_v16  ;;  %v2792_v62 = vld [vmem:[%s3111_s0 + $0x3d0] sm:$0xff]  ;;  %3145 = vst [vmem:[#allocation19_spill] sm:$0xff] %v2797_v58  ;;  %v2809_v25 = vld [vmem:[%s3111_s0 + $0x2d8] sm:$0xff]  ;;  %v975_v16 = vsel %vm864_vm0, %v2146_v4, 0.0 }
  0x95   :  { %1427 = vmatprep.subr.bf16.mxu1 %v1426_v8  ;;  %3144 = vst [vmem:[#allocation18_spill] sm:$0xff] %v2792_v62  ;;  %v2804_v8 = vld [vmem:[%s3111_s0 + $0x2d0] sm:$0xff]  ;;  %v1434_v26 = vpack.c.bf16 %v2797_v58, %v2792_v62  ;;  %v2856_v62 = vld [vmem:[%s3111_s0 + $0x2e0] sm:$0xff] }
  0x96   :  { %v972_v48 = vadd.f32 %v971_v1, %v970_v43  ;;  %1397 = vmatpush3.bf16.msra.mxu0 %v1396_v37  ;;  %v1432_v37 = vpack.c.bf16 %v2780_v46, %v2775_v44  ;;  %v1402_v1 = vpack.c.bf16 %v2809_v25, %v2804_v8  ;;  %v2827_v4 = vld [vmem:[%s3111_s0 + $0x350] sm:$0xff] }
  0x97   :  { %1399 = vmatprep.subr.bf16.mxu0 %v1398_v24  ;;  %v977_v24 = vsel %vm864_vm0, %v2151_v5, 0.0 }
  0x98   :  { %1429 = vmatpush3.bf16.msra.mxu1 %v1428_v23  ;;  %v974_v43 = vadd.f32 %v973_v36, %v972_v48  ;;  %v2832_v23 = vld [vmem:[%s3111_s0 + $0x358] sm:$0xff]  ;;  %v2844_v36 = vld [vmem:[%s3111_s0 + $0x3e0] sm:$0xff]  ;;  %v2849_v48 = vld [vmem:[%s3111_s0 + $0x3e8] sm:$0xff] }
  0x99   :  { %1431 = vmatprep.subr.bf16.mxu1 %v1430_v10  ;;  %v2839_v10 = vld [vmem:[%s3111_s0 + $0x258] sm:$0xff]  ;;  %3146 = vst [vmem:[#allocation20_spill] sm:$0xff] %v2844_v36  ;;  %3147 = vst [vmem:[#allocation21_spill] sm:$0xff] %v2849_v48  ;;  %v1438_v59 = vpack.c.bf16 %v2849_v48, %v2844_v36  ;;  %v2908_v36 = vld [vmem:[%s3111_s0 + $0x2f0] sm:$0xff] }
  0x9a   :  { %v976_v58 = vadd.f32 %v975_v16, %v974_v43  ;;  %1401 = vmatpush3.bf16.msra.mxu0 %v1400_v47  ;;  %v1404_v5 = vpack.c.bf16 %v2839_v10, %v2820_v33  ;;  %v1436_v47 = vpack.c.bf16 %v2832_v23, %v2827_v4  ;;  %v1406_v16 = vpack.c.bf16 %v2861_v52, %v2856_v62 }
  0x9b   :  { %1403 = vmatprep.subr.bf16.mxu0 %v1402_v1  ;;  %v2896_v1 = vld [vmem:[%s3111_s0 + $0x3f0] sm:$0xff] }
  0x9c   :  { %1433 = vmatpush3.bf16.msra.mxu1 %v1432_v37  ;;  %v978_v43 = vadd.f32 %v977_v24, %v976_v58  ;;  %v2884_v37 = vld [vmem:[%s3111_s0 + $0x368] sm:$0xff]  ;;  %v981_v58 = vsel %vm864_vm0, %v2215_v39, 0.0  ;;  %3150 = vst [vmem:[#allocation24_spill] sm:$0xff] %v2896_v1  ;;  %v2901_v24 = vld [vmem:[%s3111_s0 + $0x3f8] sm:$0xff] }
  0x9d   :  { %1435 = vmatprep.subr.bf16.mxu1 %v1434_v26  ;;  %3149 = vst [vmem:[#allocation23_spill] sm:$0xff] %v2884_v37  ;;  %v2891_v26 = vld [vmem:[%s3111_s0 + $0x268] sm:$0xff]  ;;  %3151 = vst [vmem:[#allocation25_spill] sm:$0xff] %v2901_v24  ;;  %v1442_v50 = vpack.c.bf16 %v2901_v24, %v2896_v1  ;;  %v987_v24 = vsel %vm864_vm0, %v2318_v53, 0.0  ;;  %v1444_v1 = vpack.c.bf16 %v2931_v13, %v2926_v32  ;;  %v993_v53 = vsel %vm864_vm0, %v2363_v6, 0.0 }
  0x9e   :  { %v980_v48 = vadd.f32 %v979_v31, %v978_v43  ;;  %1405 = vmatpush3.bf16.msra.mxu0 %v1404_v5  ;;  %v1408_v39 = vpack.c.bf16 %v2891_v26, %v2872_v55  ;;  %v1440_v31 = vpack.c.bf16 %v2884_v37, %v2879_v38  ;;  %v1410_v5 = vpack.c.bf16 %v2913_v56, %v2908_v36 }
  0x9f   :  { %1407 = vmatprep.subr.bf16.mxu0 %v1406_v16  ;;  %v989_v37 = vsel %vm864_vm0, %v2323_v54, 0.0  ;;  %v274_v54 = vld [vmem:[%s3113_s2] sm:$0xff] }
  0xa0   :  { %1437 = vmatpush3.bf16.msra.mxu1 %v1436_v47  ;;  %v982_v43 = vadd.f32 %v981_v58, %v980_v48  ;;  %v985_v47 = vsel %vm864_vm0, %v2269_v14, 0.0  ;;  %v97_v48 = vld [vmem:[%s3111_s0 + $0x278] sm:$0xff] }
  0xa1   :  { %1439 = vmatprep.subr.bf16.mxu1 %v1438_v59  ;;  %v96_v59 = vld [vmem:[%s3111_s0 + $0x270] sm:$0xff] }
  0xa2   :  { %v984_v16 = vadd.f32 %v983_v11, %v982_v43  ;;  %1409 = vmatpush3.bf16.msra.mxu0 %v1408_v39  ;;  %v1412_v58 = vpack.c.bf16 %v97_v48, %v96_v59  ;;  %v991_v11 = vsel %vm864_vm0, %v2358_v22, 0.0  ;;  %v999_v22 = vsel %vm864_vm0, %v2622_v61, 0.0 }
  0xa3   :  { %1411 = vmatprep.subr.bf16.mxu0 %v1410_v5  ;;  %v995_v5 = vsel %vm864_vm0, %v2572_v60, 0.0  ;;  %v1001_v60 = vsel %vm864_vm0, %v2629_v3, 0.0  ;;  %v1005_v61 = vsel %vm864_vm0, %v2683_v15, 0.0  ;;  %v1009_v3 = vsel %vm864_vm0, %v2735_v7, 0.0 }
  0xa4   :  { %1441 = vmatpush3.bf16.msra.mxu1 %v1440_v31  ;;  %v986_v14 = vadd.f32 %v985_v47, %v984_v16  ;;  %v1015_v15 = vsel %vm864_vm0, %v2820_v33, 0.0  ;;  %v1019_v7 = vsel %vm864_vm0, %v2872_v55, 0.0 }
  0xa5   :  { %1443 = vmatprep.subr.bf16.mxu1 %v1442_v50  ;;  %v997_v50 = vsel %vm864_vm0, %v2579_v29, 0.0  ;;  %v275_v29 = vld [vmem:[%s3113_s2 + $0x8] sm:$0x7]  ;;  %s1662_s2 = smov [#allocation2]  }
  0xa6   :  { %v988_v38 = vadd.f32 %v987_v24, %v986_v14  ;;  %1413 = vmatpush3.bf16.msra.mxu0 %v1412_v58  ;;  %v1007_v58 = vsel %vm864_vm0, %v2716_v49, 0.0  ;;  %v1017_v49 = vsel %vm864_vm0, %v2839_v10, 0.0  ;;  %v1025_v10 = vsel %vm864_vm0, %v97_v48, 0.0  ;;  %s1140_s5 = sshll.u32 %s1662_s2, 4  ;;  %s1141_s5 = int_to_ptr.vmem [resolvable:$true] %s1140_s5 }
  0xa7   :  { %s1624_s6 = scalar_lea.vmem %s1141_s5, 256  ;;  %p1629_p1 = scmp.lt.s32.totalorder %s1141_s5, %s1141_s5 }
  0xa8   :  { %1445 = vmatpush3.bf16.msra.mxu1 %v1444_v1  ;;  %v990_v39 = vadd.f32 %v989_v37, %v988_v38  ;;  %v1660_v38 = vmov 0   ;;  %v1003_v1 = vsel %vm864_vm0, %v2664_v45, 0.0  ;;  %v1013_v45 = vsel %vm864_vm0, %v2787_v19, 0.0  ;;  %p1625_p0 = scmp.ne.s32.totalorder %s1141_s5, %s1624_s6  ;;  %p1630_p2 = scmp.lt.s32.totalorder %s1624_s6, %s1624_s6 }
  0xa9   :  { %1622 = vset.pattern.permute.xlu1 %v1660_v38 }
  0xaa   :  { %v992_v31 = vadd.f32 %v991_v11, %v990_v39  ;;  %1623 = vset.pattern.permute.xlu0 %v1660_v38  ;;  %278 = vperm.xlu1 %1622, %v274_v54   ;;  %v1011_v39 = vsel %vm864_vm0, %v2768_v30, 0.0  ;;  %v1021_v30 = vsel %vm864_vm0, %v2891_v26, 0.0  ;;  %p1631_p3 = por %p1630_p2, %p1629_p1 }
  0xac   :  { %v994_v43 = vadd.f32 %v993_v53, %v992_v31  ;;  %p1632_p4 = pnand %p1631_p3, %p1625_p0 }
  0xae   :  { %v996_v47 = vadd.f32 %v995_v5, %v994_v43  ;;  %283 = vperm.xlu1 %1622, %v275_v29  }
  0xb0   :  { %v998_v6 = vadd.f32 %v997_v50, %v996_v47  ;;  %v1023_v47 = vsel %vm864_vm0, %v96_v59, 0.0 }
  0xb2   :  { %v1000_v37 = vadd.f32 %v999_v22, %v998_v6 }
  0xb4   :  { %v1002_v24 = vadd.f32 %v1001_v60, %v1000_v37  ;;  %v1027_v37 = vsel %vm864_vm0, %v2278_v20, 0.0  ;;  %v1031_v20 = vsel %vm864_vm0, %v2584_v51, 0.0  ;;  %v1041_v51 = vsel %vm864_vm0, %v2705_v28, 0.0 }
  0xb5   :  { %v1051_v28 = vsel %vm864_vm0, %v2856_v62, 0.0  ;;  %v1061_v62 = vsel %vm864_vm0, %v2565_v2, 0.0  ;;  %v1071_v2 = vsel %vm864_vm0, %v2723_v34, 0.0  ;;  %v1081_v34 = vsel %vm864_vm0, %v2832_v23, 0.0 }
  0xb6   :  { %v1004_v16 = vadd.f32 %v1003_v1, %v1002_v24 }
  0xb8   :  { %v1006_v14 = vadd.f32 %v1005_v61, %v1004_v16 }
  0xba   :  { %v1008_v11 = vadd.f32 %v1007_v58, %v1006_v14  ;;  %v1029_v14 = vsel %vm864_vm0, %v2283_v21, 0.0 }
  0xbc   :  { %v1010_v53 = vadd.f32 %v1009_v3, %v1008_v11  ;;  %v1033_v11 = vsel %vm864_vm0, %v2589_v12, 0.0  ;;  %v1043_v12 = vsel %vm864_vm0, %v2752_v0, 0.0  ;;  %v1053_v0 = vsel %vm864_vm0, %v2861_v52, 0.0 }
  0xbd   :  { %v1063_v52 = vsel %vm864_vm0, %v2612_v18, 0.0  ;;  %v1073_v18 = vsel %vm864_vm0, %v2728_v41, 0.0 }
  0xbe   :  { %v1012_v31 = vadd.f32 %v1011_v39, %v1010_v53  ;;  %v1035_v53 = vsel %vm864_vm0, %v2636_v17, 0.0  ;;  %v1045_v17 = vsel %vm864_vm0, %v2757_v42, 0.0  ;;  %v1055_v42 = vsel %vm864_vm0, %v2908_v36, 0.0 }
  0xbf   :  { %v1065_v36 = vsel %vm864_vm0, %v2617_v57, 0.0  ;;  %v1075_v57 = vsel %vm864_vm0, %v2775_v44, 0.0 }
  0xc0   :  { %v1014_v5 = vadd.f32 %v1013_v45, %v1012_v31  ;;  %v1037_v31 = vsel %vm864_vm0, %v2641_v35, 0.0  ;;  %v1047_v35 = vsel %vm864_vm0, %v2804_v8, 0.0  ;;  %v1057_v8 = vsel %vm864_vm0, %v2913_v56, 0.0 }
  0xc1   :  { %v1067_v56 = vsel %vm864_vm0, %v2671_v9, 0.0  ;;  %v1077_v9 = vsel %vm864_vm0, %v2780_v46, 0.0  ;;  %v1087_v46 = vsel %vm864_vm0, %v2926_v32, 0.0 }
  0xc2   :  { %v1016_v43 = vadd.f32 %v1015_v15, %v1014_v5  ;;  %v1039_v15 = vsel %vm864_vm0, %v2700_v40, 0.0  ;;  %v1049_v40 = vsel %vm864_vm0, %v2809_v25, 0.0  ;;  %v1059_v25 = vsel %vm864_vm0, %v2560_v63, 0.0 }
  0xc3   :  { %v1069_v63 = vsel %vm864_vm0, %v2676_v27, 0.0  ;;  %v1079_v27 = vsel %vm864_vm0, %v2827_v4, 0.0  ;;  %v1089_v4 = vsel %vm864_vm0, %v2931_v13, 0.0 }
  0xc4   :  { %v1018_v50 = vadd.f32 %v1017_v49, %v1016_v43 }
  0xc5   :  { %v1570_v54 = vpop.trf.xlu0 }
  0xc6   :  { %v1020_v19 = vadd.f32 %v1019_v7, %v1018_v50  ;;  %v1574_v22 = vunpack.i.h.bf16 %v1570_v54  ;;  %v1571_v33 = vunpack.i.l.bf16 %v1570_v54 }
  0xc7   :  { %v1612_v38 = vpop.trf.xlu1 }
  0xc8   :  { %v1616_v6 = vunpack.i.h.bf16 %v1612_v38  ;;  %v1022_v60 = vadd.f32 %v1021_v30, %v1020_v19  ;;  %v1613_v29 = vunpack.i.l.bf16 %v1612_v38  ;;  %756 = vmatprep.mubr.f32.mxu0 %v1571_v33 }
  0xc9   :  { %v1575_v55 = vpop.trf.xlu0  ;;  %757 = vmatmul.mubr.f32.vlgmr.msra.gmra.mrb[4].mxu0 %v1574_v22 }
  0xca   :  { %v1024_v1 = vadd.f32 %v1023_v47, %v1022_v60  ;;  %831 = vmatprep.mubr.f32.mxu1 %v1613_v29  ;;  %v1576_v59 = vunpack.i.l.bf16 %v1575_v55  ;;  %v1579_v24 = vunpack.i.h.bf16 %v1575_v55 }
  0xcb   :  { %v1617_v26 = vpop.trf.xlu1  ;;  %832 = vmatmul.mubr.f32.vlgmr.msra.gmra.mrb[4].mxu1 %v1616_v6 }
  0xcc   :  { %v1618_v61 = vunpack.i.l.bf16 %v1617_v26  ;;  %v1026_v16 = vadd.f32 %v1025_v10, %v1024_v1  ;;  %761 = vmatprep.mubr.f32.mxu0 %v1576_v59  ;;  %v1621_v58 = vunpack.i.h.bf16 %v1617_v26 }
  0xcd   :  { %762 = vmatmul.mubr.f32.gmra.mrb[6].mxu0 %v1579_v24 }
  0xce   :  { %836 = vmatprep.mubr.f32.mxu1 %v1618_v61  ;;  %v1028_v48 = vadd.f32 %v1027_v37, %v1026_v16  ;;  %v3152_v61 = vld [vmem:[#allocation22_spill] sm:$0xff] }
  0xcf   :  { %837 = vmatmul.mubr.f32.gmra.mrb[6].mxu1 %v1621_v58  ;;  %v1083_v41 = vsel %vm864_vm0, %v3152_v61, 0.0  ;;  %v3153_v58 = vld [vmem:[#allocation23_spill] sm:$0xff] }
  0xd0   :  { %v1030_v3 = vadd.f32 %v1029_v14, %v1028_v48  ;;  %v1085_v44 = vsel %vm864_vm0, %v3153_v58, 0.0 }
  0xd2   :  { %v1032_v39 = vadd.f32 %v1031_v20, %v1030_v3  ;;  %v3154_v3 = vld [vmem:[#allocation8_spill] sm:$0xff] }
  0xd3   :  { %v1091_v23 = vsel %vm864_vm0, %v3154_v3, 0.0 }
  0xd4   :  { %v1034_v45 = vadd.f32 %v1033_v11, %v1032_v39  ;;  %v3155_v39 = vld [vmem:[#allocation9_spill] sm:$0xff] }
  0xd6   :  { %v1036_v21 = vadd.f32 %v1035_v53, %v1034_v45  ;;  %v1093_v53 = vsel %vm864_vm0, %v3155_v39, 0.0 }
  0xd8   :  { %v1038_v5 = vadd.f32 %v1037_v31, %v1036_v21  ;;  %v3156_v31 = vld [vmem:[#allocation10_spill] sm:$0xff] }
  0xd9   :  { %v1095_v21 = vsel %vm864_vm0, %v3156_v31, 0.0 }
  0xda   :  { %v1040_v49 = vadd.f32 %v1039_v15, %v1038_v5  ;;  %v3157_v5 = vld [vmem:[#allocation11_spill] sm:$0xff] }
  0xdb   :  { %v1097_v32 = vsel %vm864_vm0, %v3157_v5, 0.0 }
  0xdc   :  { %v1042_v43 = vadd.f32 %v1041_v51, %v1040_v49  ;;  %v3158_v49 = vld [vmem:[#allocation12_spill] sm:$0xff] }
  0xdd   :  { %v1099_v13 = vsel %vm864_vm0, %v3158_v49, 0.0 }
  0xde   :  { %v1044_v7 = vadd.f32 %v1043_v12, %v1042_v43  ;;  %v3159_v43 = vld [vmem:[#allocation13_spill] sm:$0xff] }
  0xe0   :  { %v1046_v50 = vadd.f32 %v1045_v17, %v1044_v7  ;;  %v1101_v17 = vsel %vm864_vm0, %v3159_v43, 0.0 }
  0xe2   :  { %v1048_v30 = vadd.f32 %v1047_v35, %v1046_v50  ;;  %v3160_v35 = vld [vmem:[#allocation14_spill] sm:$0xff] }
  0xe3   :  { %v1103_v50 = vsel %vm864_vm0, %v3160_v35, 0.0 }
  0xe4   :  { %v1050_v47 = vadd.f32 %v1049_v40, %v1048_v30  ;;  %v3161_v30 = vld [vmem:[#allocation15_spill] sm:$0xff] }
  0xe6   :  { %v1052_v54 = vadd.f32 %v1051_v28, %v1050_v47  ;;  %v1105_v28 = vsel %vm864_vm0, %v3161_v30, 0.0  ;;  %v1661_v30 = vmov 0.0  }
  0xe8   :  { %v1054_v19 = vadd.f32 %v1053_v0, %v1052_v54  ;;  %v3162_v0 = vld [vmem:[#allocation16_spill] sm:$0xff] }
  0xe9   :  { %v1107_v54 = vsel %vm864_vm0, %v3162_v0, 0.0 }
  0xea   :  { %v1056_v22 = vadd.f32 %v1055_v42, %v1054_v19  ;;  %v3163_v19 = vld [vmem:[#allocation17_spill] sm:$0xff] }
  0xec   :  { %v1058_v38 = vadd.f32 %v1057_v8, %v1056_v22  ;;  %v1109_v8 = vsel %vm864_vm0, %v3163_v19, 0.0 }
  0xee   :  { %v1060_v6 = vadd.f32 %v1059_v25, %v1058_v38  ;;  %v3164_v25 = vld [vmem:[#allocation18_spill] sm:$0xff] }
  0xef   :  { %v1111_v38 = vsel %vm864_vm0, %v3164_v25, 0.0 }
  0xf0   :  { %v1062_v33 = vadd.f32 %v1061_v62, %v1060_v6  ;;  %v3165_v6 = vld [vmem:[#allocation19_spill] sm:$0xff] }
  0xf2   :  { %v1064_v60 = vadd.f32 %v1063_v52, %v1062_v33  ;;  %v1113_v52 = vsel %vm864_vm0, %v3165_v6, 0.0 }
  0xf4   :  { %v1066_v29 = vadd.f32 %v1065_v36, %v1064_v60  ;;  %v3166_v36 = vld [vmem:[#allocation20_spill] sm:$0xff] }
  0xf5   :  { %v1115_v60 = vsel %vm864_vm0, %v3166_v36, 0.0 }
  0xf6   :  { %v1068_v10 = vadd.f32 %v1067_v56, %v1066_v29  ;;  %v3167_v29 = vld [vmem:[#allocation21_spill] sm:$0xff] }
  0xf8   :  { %v1070_v37 = vadd.f32 %v1069_v63, %v1068_v10  ;;  %v1117_v63 = vsel %vm864_vm0, %v3167_v29, 0.0 }
  0xfa   :  { %v1072_v55 = vadd.f32 %v1071_v2, %v1070_v37  ;;  %v3168_v2 = vld [vmem:[#allocation24_spill] sm:$0xff] }
  0xfb   :  { %v1119_v37 = vsel %vm864_vm0, %v3168_v2, 0.0 }
  0xfc   :  { %v1074_v1 = vadd.f32 %v1073_v18, %v1072_v55  ;;  %v3169_v55 = vld [vmem:[#allocation25_spill] sm:$0xff] }
  0xfe   :  { %v1076_v26 = vadd.f32 %v1075_v57, %v1074_v1  ;;  %v1121_v57 = vsel %vm864_vm0, %v3169_v55, 0.0 }
 0x100   :  { %v1078_v59 = vadd.f32 %v1077_v9, %v1076_v26 }
 0x102   :  { %v1080_v24 = vadd.f32 %v1079_v27, %v1078_v59 }
 0x104   :  { %v1082_v16 = vadd.f32 %v1081_v34, %v1080_v24 }
 0x106   :  { %v1084_v14 = vadd.f32 %v1083_v41, %v1082_v16 }
 0x108   :  { %v1086_v48 = vadd.f32 %v1085_v44, %v1084_v14 }
 0x10a   :  { %v1088_v20 = vadd.f32 %v1087_v46, %v1086_v48 }
 0x10c   :  { %v1090_v11 = vadd.f32 %v1089_v4, %v1088_v20 }
 0x10e   :  { %v1092_v45 = vadd.f32 %v1091_v23, %v1090_v11 }
 0x110   :  { %v1094_v15 = vadd.f32 %v1093_v53, %v1092_v45 }
 0x112   :  { %v1096_v51 = vadd.f32 %v1095_v21, %v1094_v15 }
 0x114   :  { %v1098_v12 = vadd.f32 %v1097_v32, %v1096_v51 }
 0x116   :  { %v1100_v7 = vadd.f32 %v1099_v13, %v1098_v12 }
 0x118   :  { %v1102_v40 = vadd.f32 %v1101_v17, %v1100_v7 }
 0x11a   :  { %v1104_v47 = vadd.f32 %v1103_v50, %v1102_v40 }
 0x11c   :  { %v1106_v42 = vadd.f32 %v1105_v28, %v1104_v47 }
 0x11e   :  { %v1108_v22 = vadd.f32 %v1107_v54, %v1106_v42 }
 0x120   :  { %v1110_v62 = vadd.f32 %v1109_v8, %v1108_v22 }
 0x122   :  { %v1112_v33 = vadd.f32 %v1111_v38, %v1110_v62 }
 0x124   :  { %v1114_v56 = vadd.f32 %v1113_v52, %v1112_v33 }
 0x126   :  { %v1116_v10 = vadd.f32 %v1115_v60, %v1114_v56 }
 0x128   :  { %v1118_v18 = vadd.f32 %v1117_v63, %v1116_v10 }
 0x129   :  { %v279_v27 = vpop.permute.xlu1 %278 }
 0x12a   :  { %v1120_v1 = vadd.f32 %v1119_v37, %v1118_v18 }
 0x12c   :  { %v1122_v9 = vadd.f32 %v1121_v57, %v1120_v1 }
 0x12d   :  { %v284_v44 = vpop.permute.xlu1 %283 }
 0x12e   :  { %1123 = vadd.xlane.f32.xlu0 %v1122_v9 }
 0x15c   :  { %v1198_v26 = vpop.f32.mrb[0].mxu0 }
 0x15d   :  { %v1199_v59 = vpop.f32.mrb[1].mxu0 }
 0x15e   :  { %v1236_v34 = vpop.f32.mrb[0].mxu1  ;;  %v1200_v24 = vadd.f32 %v1199_v59, %v1198_v26 }
 0x15f   :  { %v1237_v61 = vpop.f32.mrb[1].mxu1 }
 0x160   :  { %v1238_v41 = vadd.f32 %v1237_v61, %v1236_v34  ;;  %v1201_v16 = vpop.f32.mrb[2].mxu0  ;;  %v609_v58 = vadd.f32 %v1200_v24, %v279_v27 }
 0x161   :  { %v1202_v14 = vpop.f32.mrb[3].mxu0 }
 0x162   :  { %v1239_v46 = vpop.f32.mrb[2].mxu1  ;;  %v1203_v48 = vadd.f32 %v1202_v14, %v1201_v16  ;;  %v684_v4 = vadd.f32 %v1238_v41, %v609_v58 }
 0x163   :  { %v1240_v20 = vpop.f32.mrb[3].mxu1 }
 0x164   :  { %v1241_v3 = vadd.f32 %v1240_v20, %v1239_v46  ;;  %v614_v23 = vadd.f32 %v1203_v48, %v284_v44 }
 0x166   :  { %v689_v11 = vadd.f32 %v1241_v3, %v614_v23 }
 0x19c   :  { %v1274_v39 = vpop.f32.mrb[4].mxu0 }
 0x19d   :  { %v1275_v53 = vpop.f32.mrb[5].mxu0 }
 0x19e   :  { %v1312_v45 = vpop.f32.mrb[4].mxu1  ;;  %v1276_v31 = vadd.f32 %v1275_v53, %v1274_v39 }
 0x19f   :  { %v1313_v21 = vpop.f32.mrb[5].mxu1 }
 0x1a0   :  { %v1314_v15 = vadd.f32 %v1313_v21, %v1312_v45  ;;  %v759_v5 = vadd.f32 %v1276_v31, %v684_v4  ;;  %v1277_v32 = vpop.f32.mrb[6].mxu0 }
 0x1a1   :  { %v1278_v51 = vpop.f32.mrb[7].mxu0 }
 0x1a2   :  { %v1315_v49 = vpop.f32.mrb[6].mxu1  ;;  %v834_v13 = vadd.f32 %v1314_v15, %v759_v5  ;;  %v1279_v12 = vadd.f32 %v1278_v51, %v1277_v32 }
 0x1a3   :  { %v1316_v43 = vpop.f32.mrb[7].mxu1 }
 0x1a4   :  { %v1317_v17 = vadd.f32 %v1316_v43, %v1315_v49  ;;  %vm842_vm1 = vcmp.gt.f32.partialorder %v834_v13, 0.0  ;;  %v844_v7 = vmul.f32 0.4, %v834_v13  ;;  %v764_v35 = vadd.f32 %v1279_v12, %v689_v11 }
 0x1a6   :  { %v846_v50 = vsel %vm842_vm1, %v834_v13, %v844_v7  ;;  %v839_v40 = vadd.f32 %v1317_v17, %v764_v35 }
 0x1a7   :  { %vm848_vm2 = vcmp.lt.f32.partialorder %v846_v50, 1.0  ;;  %v856_v54 = vmul.f32 0.2, %v846_v50 }
 0x1a8   :  { %v1164_v28 = vsel %vm848_vm2, 1.0, %v1661_v30  ;;  %vm843_vm3 = vcmp.gt.f32.partialorder %v839_v40, 0.0  ;;  %v845_v47 = vmul.f32 0.4, %v839_v40 }
 0x1a9   :  { %v854_v0 = vmul.f32 0.1, %v1164_v28 }
 0x1aa   :  { %v847_v42 = vsel %vm843_vm3, %v839_v40, %v845_v47 }
 0x1ab   :  { %v858_v19 = vsel %vm848_vm2, %v856_v54, %v854_v0  ;;  %vm849_vm4 = vcmp.lt.f32.partialorder %v847_v42, 1.0  ;;  %v857_v8 = vmul.f32 0.2, %v847_v42 }
 0x1ac   :  { %v860_v22 = vmul.f32 -0.9, %v858_v19  ;;  %v1165_v25 = vsel %vm849_vm4, 1.0, %v1661_v30 }
 0x1ad   :  { %v855_v38 = vmul.f32 0.1, %v1165_v25 }
 0x1ae   :  { %v862_v62 = vsel %vm848_vm2, %v860_v22, %v854_v0 }
 0x1af   :  { %v859_v6 = vsel %vm849_vm4, %v857_v8, %v855_v38  ;;  %865 = vst.msk [vmem:[#allocation2] sm:$0xff] %vm864_vm0, %v862_v62 }
 0x1b0   :  { %v861_v52 = vmul.f32 -0.9, %v859_v6 }
 0x1b2   :  { %v863_v33 = vsel %vm849_vm4, %v861_v52, %v855_v38 }
 0x1b3   :  { %867 = vst.msk [vmem:[#allocation2 + $0x8] sm:$0x7] %vm866_vm5, %v863_v33 }
 0x1b4   :  { %1635 = shalt.err (!%p1632_p4)
}
 0x1b5   :  { %s1636_s9 = scalar_lea.hbm %s3114_s3, 256 }
 0x1b6   :  { %p1637_p5 = scmp.ne.s32.totalorder %s3114_s3, %s1636_s9  ;;  %p1640_p6 = scmp.lt.u32.totalorder %s1636_s9, %s3114_s3 }
 0x1b8   :  { %p1642_p7 = pnand %p1640_p6, %p1637_p5 }
 0x1ba   :  { %1645 = shalt.err (!%p1642_p7)
}
 0x1bb   :  { %s1663_s14 = smov 128   ;;  %s1664_s15 = smov 8   ;;  %v1124_v36 = vpop.xlane.xlu0 %1123 }
 0x1bc   :  { %1146 = dma.vmem_to_hbm [thread:$0]  %s1141_s5, 256, %s3114_s3, [#allocation3], %s1663_s14, %s1663_s14, %s1664_s15   ;;  %v1125_v60 = vrot.slane %v1124_v36, 4 }
 0x1bd   :  { %s1646_s21 = scalar_lea.hbm %s3115_s4, 16 }
 0x1be   :  { %v1126_v56 = vadd.f32 %v1125_v60, %v1124_v36  ;;  %p1647_p8 = scmp.ne.s32.totalorder %s3115_s4, %s1646_s21  ;;  %p1650_p9 = scmp.lt.u32.totalorder %s1646_s21, %s3115_s4 }
 0x1c0   :  { %v1127_v29 = vrot.slane %v1126_v56, 2  ;;  %p1652_p10 = pnand %p1650_p9, %p1647_p8 }
 0x1c2   :  { %v1128_v63 = vadd.f32 %v1127_v29, %v1126_v56 }
 0x1c4   :  { %v1129_v10 = vrot.slane %v1128_v63, 1 }
 0x1c6   :  { %v1130_v2 = vadd.f32 %v1129_v10, %v1128_v63 }
 0x1c8   :  { %1446 = vpush %v1130_v2 }
 0x1f9   :  { %s1447_s17 = spop %1446 }
 0x1fa   :  { %s1132_s18 = smul.f32 8.877841e-05, %s1447_s17 }
 0x1fc   :  { %1134 = sst [smem:[#allocation5]] %s1132_s18 }
 0x1fd   :  { %1655 = shalt.err (!%p1652_p10)
}
 0x1fe   :  { %s1665_s25 = smov [#allocation5]  }
 0x1ff   :  { %1154 = dma.smem_to_hbm %s1665_s25, 16, %s3115_s4, [#allocation4]  }
 0x200   :  { %1656 = dma.done.wait [#allocation3], 256  }
 0x201   :  { %1657 = vsyncadd [#allocation3], 4294967040 }
 0x202   :  { %1658 = dma.done.wait [#allocation4], 16  }
 0x203   :  { %1659 = vsyncadd [#allocation4], 4294967280 }
 0x204   :  { %1161 = sfence }
 0x205   :  { %1162 = vsyncpa [#allocation3], 1 }
 0x206   :  { %1163 = vsyncpa [#allocation4], 1 }

</bundles_post_ra>
